<compile_context>
chip_gen: v7x
topology: tpu7x:2x2x1
jax: 0.10.0
libtpu: 0.0.40
codegen_flags: <defaults>
</compile_context>

<pallas_src>
import functools

import numpy as np
import jax
import jax.numpy as jnp
from jax.experimental import pallas as pl
from jax.experimental.pallas import tpu as pltpu

LANES = 128      # TPU lane width: lane-pad all matrices to multiples of this
SUBLANES = 8     # f32 sublane count: row-pad to multiples of this


def _round_up(x, d):
    return (x + d - 1) // d * d


# ----------------------------------------------------------------------------
# Fused kernel: all 4 conv+activation layers for ONE image, resident in VMEM.
# ----------------------------------------------------------------------------
def _fused_discriminator_kernel(x_ref,
                                q1, s1, b1, q2, s2, b2,
                                q3, s3, b3, q4, s4, b4,
                                o_ref, *, activations):
    """refs:
      x_ref : (1, rows_in, lanes_in)         bf16  image as (H, W*C) slab
      q_l   : (k, lanes_in_l, lanes_out_l)   bf16  per-tap folded conv weights
      s_l   : (k, rows_out_l, rows_in_l)     bf16  per-tap 0/1 row selection
      b_l   : (1, lanes_out_l)               f32   bias tiled over Wo
      o_ref : (1, rows_out_4, lanes_out_4)   f32   real value at [0, 0, 0]
    """
    wrefs = (q1, s1, b1, q2, s2, b2, q3, s3, b3, q4, s4, b4)
    a = x_ref[0]                                   # (rows_in, lanes_in) bf16
    acc = None
    for l, act in enumerate(activations):
        q_ref, s_ref, b_ref = wrefs[3 * l], wrefs[3 * l + 1], wrefs[3 * l + 2]
        acc = None
        for i in range(q_ref.shape[0]):            # kernel-height taps (4)
            # Row selection (stride/pad along H) as an exact 0/1 matmul.
            sel = jnp.dot(s_ref[i], a,
                          preferred_element_type=jnp.float32).astype(jnp.bfloat16)
            # Folded (kernel-col taps, C_in) -> (Wo, C_out) matmul, f32 acc.
            part = jnp.dot(sel, q_ref[i], preferred_element_type=jnp.float32)
            acc = part if acc is None else acc + part
        acc = acc + b_ref[...]                     # bias in f32
        if act == "leaky_relu":
            acc = jnp.where(acc > 0, acc, 0.2 * acc)
        else:                                      # sigmoid (final layer)
            acc = jax.nn.sigmoid(acc)
        a = acc.astype(jnp.bfloat16)               # feeds the next layer
    o_ref[0] = acc.astype(o_ref.dtype)             # final layer kept in f32


# ----------------------------------------------------------------------------
# Host-side folding of one Conv2d into (Q_i, S_i, bias_row) matrices.
# ----------------------------------------------------------------------------
def _prep_conv_layer(w_oihw, b, h, w, rows_in, lanes_in, stride, pad):
    co, ci, kh, kw = w_oihw.shape
    ho = (h + 2 * pad - kh) // stride + 1
    wo = (w + 2 * pad - kw) // stride + 1
    rows_out = max(_round_up(ho, SUBLANES), SUBLANES)
    lanes_out = _round_up(wo * co, LANES)

    # Mw[wp, j, wo] = 1 iff wp == stride*wo - pad + j  (static numpy constant).
    mw = np.zeros((w, kw, wo), np.float32)
    for j in range(kw):
        for wo_i in range(wo):
            wp = stride * wo_i - pad + j
            if 0 <= wp < w:
                mw[wp, j, wo_i] = 1.0

    # Q[i, wp*C + c, wo*Co + co] = sum_j Mw[wp, j, wo] * W[co, c, i, j]
    q = jnp.einsum("ajb,ocij->iacbo", mw, w_oihw.astype(jnp.float32))
    q = q.reshape(kh, w * ci, wo * co)
    q = jnp.pad(q, ((0, 0), (0, lanes_in - w * ci), (0, lanes_out - wo * co)))
    q = q.astype(jnp.bfloat16)

    # S[i, ho, hp] = 1 iff hp == stride*ho - pad + i  (static numpy constant).
    # Padded rows of the previous layer's slab (hp >= h) are never selected.
    s = np.zeros((kh, rows_out, rows_in), np.float32)
    for i in range(kh):
        for ho_i in range(ho):
            hp = stride * ho_i - pad + i
            if 0 <= hp < h:
                s[i, ho_i, hp] = 1.0
    s = jnp.asarray(s, dtype=jnp.bfloat16)

    # Bias tiled over Wo so lane (wo*Co + co) gets b[co]; zero in padded lanes.
    brow = jnp.pad(jnp.tile(b.astype(jnp.float32), wo), (0, lanes_out - wo * co))
    brow = brow.reshape(1, lanes_out)

    return q, s, brow, ho, wo, co, rows_out, lanes_out


# ----------------------------------------------------------------------------
# Pallas-backed forward pass.  Input NCHW f32, output (N, 1) f32.
# ----------------------------------------------------------------------------
def discriminator_forward(x_nchw, params):
    n, c, h, w = x_nchw.shape

    layers = [
        (params["w1"], params["b1"], 2, 1, "leaky_relu"),
        (params["w2"], params["b2"], 2, 1, "leaky_relu"),
        (params["w3"], params["b3"], 2, 1, "leaky_relu"),
        (params["w4"], params["b4"], 1, 0, "sigmoid"),
    ]

    # Network input as a lane-dense (rows=H, lanes=W*C) bf16 slab per image.
    rows_in = max(_round_up(h, SUBLANES), SUBLANES)
    lanes_in = _round_up(w * c, LANES)
    x = jnp.transpose(x_nchw, (0, 2, 3, 1)).astype(jnp.bfloat16)   # NHWC
    x = x.reshape(n, h, w * c)
    x = jnp.pad(x, ((0, 0), (0, rows_in - h), (0, lanes_in - w * c)))

    weight_args = []
    in_specs = [pl.BlockSpec((1, rows_in, lanes_in), lambda i: (i, 0, 0))]
    activations = []
    flops = 0
    cur_h, cur_w, cur_c = h, w, c
    cur_rows, cur_lanes = rows_in, lanes_in
    for (wgt, bias, stride, pad, act) in layers:
        q, s, brow, ho, wo, co, rows_out, lanes_out = _prep_conv_layer(
            wgt, bias, cur_h, cur_w, cur_rows, cur_lanes, stride, pad)
        weight_args += [q, s, brow]
        in_specs += [
            pl.BlockSpec(q.shape, lambda i: (0, 0, 0)),     # grid-invariant
            pl.BlockSpec(s.shape, lambda i: (0, 0, 0)),
            pl.BlockSpec(brow.shape, lambda i: (0, 0)),
        ]
        activations.append(act)
        kh, kw = wgt.shape[2], wgt.shape[3]
        flops += 2 * n * ho * wo * kh * kw * cur_c * co      # real conv FLOPs
        cur_h, cur_w, cur_c = ho, wo, co
        cur_rows, cur_lanes = rows_out, lanes_out

    out_rows, out_lanes = cur_rows, cur_lanes
    bytes_accessed = int(
        x.size * 2
        + sum(a.size * jnp.dtype(a.dtype).itemsize for a in weight_args)
        + n * out_rows * out_lanes * 4)
    cost = pl.CostEstimate(flops=int(flops),
                           transcendentals=int(n * cur_h * cur_w * cur_c),
                           bytes_accessed=bytes_accessed)

    out = pl.pallas_call(
        functools.partial(_fused_discriminator_kernel,
                          activations=tuple(activations)),
        out_shape=jax.ShapeDtypeStruct((n, out_rows, out_lanes), jnp.float32),
        grid=(n,),
        in_specs=in_specs,
        out_specs=pl.BlockSpec((1, out_rows, out_lanes), lambda i: (i, 0, 0)),
        compiler_params=pltpu.CompilerParams(
            dimension_semantics=("parallel",),       # shard images over TCs
            vmem_limit_bytes=32 * 1024 * 1024),
        cost_estimate=cost,
    )(x, *weight_args)

    # Final conv is 1x1 spatial with 1 channel -> PyTorch .view(-1, 1).
    return out[:, 0, 0].reshape(-1, 1)


# ----------------------------------------------------------------------------
# Pure-JAX reference (XLA conv, f32) for correctness check.
# ----------------------------------------------------------------------------
def discriminator_reference(x_nchw, params):
    def conv(x, w, b, stride, pad):
        y = jax.lax.conv_general_dilated(
            x, w, window_strides=(stride, stride),
            padding=[(pad, pad), (pad, pad)],
            dimension_numbers=("NCHW", "OIHW", "NCHW"))
        return y + b.reshape(1, -1, 1, 1)

    x = conv(x_nchw, params["w1"], params["b1"], 2, 1)
    x = jnp.where(x > 0, x, 0.2 * x)
    x = conv(x, params["w2"], params["b2"], 2, 1)
    x = jnp.where(x > 0, x, 0.2 * x)
    x = conv(x, params["w3"], params["b3"], 2, 1)
    x = jnp.where(x > 0, x, 0.2 * x)
    x = conv(x, params["w4"], params["b4"], 1, 0)
    x = jax.nn.sigmoid(x)
    return x.reshape(-1, 1)


def init_params(key, image_channels, feature_maps):
    fm = feature_maps
    shapes = {
        "w1": (fm, image_channels, 4, 4), "b1": (fm,),
        "w2": (2 * fm, fm, 4, 4),         "b2": (2 * fm,),
        "w3": (4 * fm, 2 * fm, 4, 4),     "b3": (4 * fm,),
        "w4": (1, 4 * fm, 4, 4),          "b4": (1,),
    }
    params = {}
    for name, shape in shapes.items():
        key, sub = jax.random.split(key)
        scale = 0.05 if name.startswith("w") else 0.01
        params[name] = scale * jax.random.normal(sub, shape, dtype=jnp.float32)
    return params


if __name__ == "__main__":
    batch = 2
    image_channels = 3
    feature_maps = 8
    spatial = 32  # 32 -> 16 -> 8 -> 4 -> 1 (required by the final 4x4 valid conv)

    key = jax.random.PRNGKey(0)
    key, kx = jax.random.split(key)
    x = jax.random.normal(kx, (batch, image_channels, spatial, spatial),
                          dtype=jnp.float32)
    params = init_params(key, image_channels, feature_maps)

    fwd = jax.jit(discriminator_forward)
    out = jax.block_until_ready(fwd(x, params))
    ref = jax.block_until_ready(discriminator_reference(x, params))

    assert out.shape == (batch, 1), f"unexpected output shape {out.shape}"
    assert jnp.all(jnp.isfinite(out)), "non-finite values in output"
    # MXU inputs are bf16 (f32 accumulation); tolerance vs the f32 XLA reference
    # is loosened accordingly (observed error after sigmoid ~1e-3).
    assert jnp.allclose(out, ref, atol=1e-2, rtol=1e-2), "mismatch vs XLA reference"

    print("KERNEL_OK")
</pallas_src>

<mosaic_0001>
module attributes {stable_mosaic.version = 11 : i64} {
  func.func @_fused_discriminator_kernel(%arg0: i32, %arg1: memref<1x32x128xbf16, #tpu.memory_space<vmem>>, %arg2: memref<4x128x128xbf16, #tpu.memory_space<vmem>>, %arg3: memref<4x16x32xbf16, #tpu.memory_space<vmem>>, %arg4: memref<1x128xf32, #tpu.memory_space<vmem>>, %arg5: memref<4x128x128xbf16, #tpu.memory_space<vmem>>, %arg6: memref<4x8x16xbf16, #tpu.memory_space<vmem>>, %arg7: memref<1x128xf32, #tpu.memory_space<vmem>>, %arg8: memref<4x128x128xbf16, #tpu.memory_space<vmem>>, %arg9: memref<4x8x8xbf16, #tpu.memory_space<vmem>>, %arg10: memref<1x128xf32, #tpu.memory_space<vmem>>, %arg11: memref<4x128x128xbf16, #tpu.memory_space<vmem>>, %arg12: memref<4x8x8xbf16, #tpu.memory_space<vmem>>, %arg13: memref<1x128xf32, #tpu.memory_space<vmem>>, %arg14: memref<1x8x128xf32, #tpu.memory_space<vmem>>) attributes {dimension_semantics = [#tpu.dimension_semantics<parallel>], iteration_bounds = array<i64: 2>, scalar_prefetch = 0 : i64, scratch_operands = 0 : i64, tpu.core_type = #tpu.core_type<tc>, window_params = [{transform_indices = @transform_0, window_bounds = array<i64: 1, 32, 128>}, {pipeline_mode = #tpu.pipeline_mode<synchronous>, transform_indices = @transform_1, window_bounds = array<i64: 4, 128, 128>}, {pipeline_mode = #tpu.pipeline_mode<synchronous>, transform_indices = @transform_2, window_bounds = array<i64: 4, 16, 32>}, {pipeline_mode = #tpu.pipeline_mode<synchronous>, transform_indices = @transform_3, window_bounds = array<i64: 1, 128>}, {pipeline_mode = #tpu.pipeline_mode<synchronous>, transform_indices = @transform_4, window_bounds = array<i64: 4, 128, 128>}, {pipeline_mode = #tpu.pipeline_mode<synchronous>, transform_indices = @transform_5, window_bounds = array<i64: 4, 8, 16>}, {pipeline_mode = #tpu.pipeline_mode<synchronous>, transform_indices = @transform_6, window_bounds = array<i64: 1, 128>}, {pipeline_mode = #tpu.pipeline_mode<synchronous>, transform_indices = @transform_7, window_bounds = array<i64: 4, 128, 128>}, {pipeline_mode = #tpu.pipeline_mode<synchronous>, transform_indices = @transform_8, window_bounds = array<i64: 4, 8, 8>}, {pipeline_mode = #tpu.pipeline_mode<synchronous>, transform_indices = @transform_9, window_bounds = array<i64: 1, 128>}, {pipeline_mode = #tpu.pipeline_mode<synchronous>, transform_indices = @transform_10, window_bounds = array<i64: 4, 128, 128>}, {pipeline_mode = #tpu.pipeline_mode<synchronous>, transform_indices = @transform_11, window_bounds = array<i64: 4, 8, 8>}, {pipeline_mode = #tpu.pipeline_mode<synchronous>, transform_indices = @transform_12, window_bounds = array<i64: 1, 128>}, {transform_indices = @transform_13, window_bounds = array<i64: 1, 8, 128>}]} {
    %c0 = arith.constant 0 : index
    %c0_0 = arith.constant 0 : index
    %c0_1 = arith.constant 0 : index
    %0 = vector.load %arg1[%c0, %c0_0, %c0_1] : memref<1x32x128xbf16, #tpu.memory_space<vmem>>, vector<1x32x128xbf16>
    %1 = vector.shape_cast %0 : vector<1x32x128xbf16> to vector<32x128xbf16>
    %c0_2 = arith.constant 0 : index
    %c0_3 = arith.constant 0 : index
    %c0_4 = arith.constant 0 : index
    %2 = vector.load %arg3[%c0_2, %c0_3, %c0_4] : memref<4x16x32xbf16, #tpu.memory_space<vmem>>, vector<1x16x32xbf16>
    %3 = vector.shape_cast %2 : vector<1x16x32xbf16> to vector<16x32xbf16>
    %cst = arith.constant dense<0.000000e+00> : vector<16x128xf32>
    %4 = tpu.matmul %3, %1, %cst {dimension_numbers = #tpu.dot_dimension_numbers<[1], [0], [0], [1], [0, 0, 1, 1], [], []>} : vector<16x32xbf16>, vector<32x128xbf16>, vector<16x128xf32> -> vector<16x128xf32>
    %5 = arith.truncf %4 : vector<16x128xf32> to vector<16x128xbf16>
    %c0_5 = arith.constant 0 : index
    %c0_6 = arith.constant 0 : index
    %c0_7 = arith.constant 0 : index
    %6 = vector.load %arg2[%c0_5, %c0_6, %c0_7] : memref<4x128x128xbf16, #tpu.memory_space<vmem>>, vector<1x128x128xbf16>
    %7 = vector.shape_cast %6 : vector<1x128x128xbf16> to vector<128x128xbf16>
    %cst_8 = arith.constant dense<0.000000e+00> : vector<16x128xf32>
    %8 = tpu.matmul %5, %7, %cst_8 {dimension_numbers = #tpu.dot_dimension_numbers<[1], [0], [0], [1], [0, 0, 1, 1], [], []>} : vector<16x128xbf16>, vector<128x128xbf16>, vector<16x128xf32> -> vector<16x128xf32>
    %c1 = arith.constant 1 : index
    %c0_9 = arith.constant 0 : index
    %c0_10 = arith.constant 0 : index
    %9 = vector.load %arg3[%c1, %c0_9, %c0_10] : memref<4x16x32xbf16, #tpu.memory_space<vmem>>, vector<1x16x32xbf16>
    %10 = vector.shape_cast %9 : vector<1x16x32xbf16> to vector<16x32xbf16>
    %cst_11 = arith.constant dense<0.000000e+00> : vector<16x128xf32>
    %11 = tpu.matmul %10, %1, %cst_11 {dimension_numbers = #tpu.dot_dimension_numbers<[1], [0], [0], [1], [0, 0, 1, 1], [], []>} : vector<16x32xbf16>, vector<32x128xbf16>, vector<16x128xf32> -> vector<16x128xf32>
    %12 = arith.truncf %11 : vector<16x128xf32> to vector<16x128xbf16>
    %c1_12 = arith.constant 1 : index
    %c0_13 = arith.constant 0 : index
    %c0_14 = arith.constant 0 : index
    %13 = vector.load %arg2[%c1_12, %c0_13, %c0_14] : memref<4x128x128xbf16, #tpu.memory_space<vmem>>, vector<1x128x128xbf16>
    %14 = vector.shape_cast %13 : vector<1x128x128xbf16> to vector<128x128xbf16>
    %cst_15 = arith.constant dense<0.000000e+00> : vector<16x128xf32>
    %15 = tpu.matmul %12, %14, %cst_15 {dimension_numbers = #tpu.dot_dimension_numbers<[1], [0], [0], [1], [0, 0, 1, 1], [], []>} : vector<16x128xbf16>, vector<128x128xbf16>, vector<16x128xf32> -> vector<16x128xf32>
    %16 = arith.addf %8, %15 : vector<16x128xf32>
    %c2 = arith.constant 2 : index
    %c0_16 = arith.constant 0 : index
    %c0_17 = arith.constant 0 : index
    %17 = vector.load %arg3[%c2, %c0_16, %c0_17] : memref<4x16x32xbf16, #tpu.memory_space<vmem>>, vector<1x16x32xbf16>
    %18 = vector.shape_cast %17 : vector<1x16x32xbf16> to vector<16x32xbf16>
    %cst_18 = arith.constant dense<0.000000e+00> : vector<16x128xf32>
    %19 = tpu.matmul %18, %1, %cst_18 {dimension_numbers = #tpu.dot_dimension_numbers<[1], [0], [0], [1], [0, 0, 1, 1], [], []>} : vector<16x32xbf16>, vector<32x128xbf16>, vector<16x128xf32> -> vector<16x128xf32>
    %20 = arith.truncf %19 : vector<16x128xf32> to vector<16x128xbf16>
    %c2_19 = arith.constant 2 : index
    %c0_20 = arith.constant 0 : index
    %c0_21 = arith.constant 0 : index
    %21 = vector.load %arg2[%c2_19, %c0_20, %c0_21] : memref<4x128x128xbf16, #tpu.memory_space<vmem>>, vector<1x128x128xbf16>
    %22 = vector.shape_cast %21 : vector<1x128x128xbf16> to vector<128x128xbf16>
    %cst_22 = arith.constant dense<0.000000e+00> : vector<16x128xf32>
    %23 = tpu.matmul %20, %22, %cst_22 {dimension_numbers = #tpu.dot_dimension_numbers<[1], [0], [0], [1], [0, 0, 1, 1], [], []>} : vector<16x128xbf16>, vector<128x128xbf16>, vector<16x128xf32> -> vector<16x128xf32>
    %24 = arith.addf %16, %23 : vector<16x128xf32>
    %c3 = arith.constant 3 : index
    %c0_23 = arith.constant 0 : index
    %c0_24 = arith.constant 0 : index
    %25 = vector.load %arg3[%c3, %c0_23, %c0_24] : memref<4x16x32xbf16, #tpu.memory_space<vmem>>, vector<1x16x32xbf16>
    %26 = vector.shape_cast %25 : vector<1x16x32xbf16> to vector<16x32xbf16>
    %cst_25 = arith.constant dense<0.000000e+00> : vector<16x128xf32>
    %27 = tpu.matmul %26, %1, %cst_25 {dimension_numbers = #tpu.dot_dimension_numbers<[1], [0], [0], [1], [0, 0, 1, 1], [], []>} : vector<16x32xbf16>, vector<32x128xbf16>, vector<16x128xf32> -> vector<16x128xf32>
    %28 = arith.truncf %27 : vector<16x128xf32> to vector<16x128xbf16>
    %c3_26 = arith.constant 3 : index
    %c0_27 = arith.constant 0 : index
    %c0_28 = arith.constant 0 : index
    %29 = vector.load %arg2[%c3_26, %c0_27, %c0_28] : memref<4x128x128xbf16, #tpu.memory_space<vmem>>, vector<1x128x128xbf16>
    %30 = vector.shape_cast %29 : vector<1x128x128xbf16> to vector<128x128xbf16>
    %cst_29 = arith.constant dense<0.000000e+00> : vector<16x128xf32>
    %31 = tpu.matmul %28, %30, %cst_29 {dimension_numbers = #tpu.dot_dimension_numbers<[1], [0], [0], [1], [0, 0, 1, 1], [], []>} : vector<16x128xbf16>, vector<128x128xbf16>, vector<16x128xf32> -> vector<16x128xf32>
    %32 = arith.addf %24, %31 : vector<16x128xf32>
    %c0_30 = arith.constant 0 : index
    %c0_31 = arith.constant 0 : index
    %33 = vector.load %arg4[%c0_30, %c0_31] : memref<1x128xf32, #tpu.memory_space<vmem>>, vector<1x128xf32>
    %34 = vector.broadcast %33 : vector<1x128xf32> to vector<16x128xf32>
    %35 = arith.addf %32, %34 : vector<16x128xf32>
    %cst_32 = arith.constant 0.000000e+00 : f32
    %36 = vector.broadcast %cst_32 : f32 to vector<16x128xf32>
    %37 = arith.cmpf ogt, %35, %36 : vector<16x128xf32>
    %cst_33 = arith.constant 2.000000e-01 : f32
    %38 = vector.broadcast %cst_33 : f32 to vector<16x128xf32>
    %39 = arith.mulf %38, %35 : vector<16x128xf32>
    %40 = arith.select %37, %35, %39 : vector<16x128xi1>, vector<16x128xf32>
    %41 = arith.truncf %40 : vector<16x128xf32> to vector<16x128xbf16>
    %c0_34 = arith.constant 0 : index
    %c0_35 = arith.constant 0 : index
    %c0_36 = arith.constant 0 : index
    %42 = vector.load %arg6[%c0_34, %c0_35, %c0_36] : memref<4x8x16xbf16, #tpu.memory_space<vmem>>, vector<1x8x16xbf16>
    %43 = vector.shape_cast %42 : vector<1x8x16xbf16> to vector<8x16xbf16>
    %cst_37 = arith.constant dense<0.000000e+00> : vector<8x128xf32>
    %44 = tpu.matmul %43, %41, %cst_37 {dimension_numbers = #tpu.dot_dimension_numbers<[1], [0], [0], [1], [0, 0, 1, 1], [], []>} : vector<8x16xbf16>, vector<16x128xbf16>, vector<8x128xf32> -> vector<8x128xf32>
    %45 = arith.truncf %44 : vector<8x128xf32> to vector<8x128xbf16>
    %c0_38 = arith.constant 0 : index
    %c0_39 = arith.constant 0 : index
    %c0_40 = arith.constant 0 : index
    %46 = vector.load %arg5[%c0_38, %c0_39, %c0_40] : memref<4x128x128xbf16, #tpu.memory_space<vmem>>, vector<1x128x128xbf16>
    %47 = vector.shape_cast %46 : vector<1x128x128xbf16> to vector<128x128xbf16>
    %cst_41 = arith.constant dense<0.000000e+00> : vector<8x128xf32>
    %48 = tpu.matmul %45, %47, %cst_41 {dimension_numbers = #tpu.dot_dimension_numbers<[1], [0], [0], [1], [0, 0, 1, 1], [], []>} : vector<8x128xbf16>, vector<128x128xbf16>, vector<8x128xf32> -> vector<8x128xf32>
    %c1_42 = arith.constant 1 : index
    %c0_43 = arith.constant 0 : index
    %c0_44 = arith.constant 0 : index
    %49 = vector.load %arg6[%c1_42, %c0_43, %c0_44] : memref<4x8x16xbf16, #tpu.memory_space<vmem>>, vector<1x8x16xbf16>
    %50 = vector.shape_cast %49 : vector<1x8x16xbf16> to vector<8x16xbf16>
    %cst_45 = arith.constant dense<0.000000e+00> : vector<8x128xf32>
    %51 = tpu.matmul %50, %41, %cst_45 {dimension_numbers = #tpu.dot_dimension_numbers<[1], [0], [0], [1], [0, 0, 1, 1], [], []>} : vector<8x16xbf16>, vector<16x128xbf16>, vector<8x128xf32> -> vector<8x128xf32>
    %52 = arith.truncf %51 : vector<8x128xf32> to vector<8x128xbf16>
    %c1_46 = arith.constant 1 : index
    %c0_47 = arith.constant 0 : index
    %c0_48 = arith.constant 0 : index
    %53 = vector.load %arg5[%c1_46, %c0_47, %c0_48] : memref<4x128x128xbf16, #tpu.memory_space<vmem>>, vector<1x128x128xbf16>
    %54 = vector.shape_cast %53 : vector<1x128x128xbf16> to vector<128x128xbf16>
    %cst_49 = arith.constant dense<0.000000e+00> : vector<8x128xf32>
    %55 = tpu.matmul %52, %54, %cst_49 {dimension_numbers = #tpu.dot_dimension_numbers<[1], [0], [0], [1], [0, 0, 1, 1], [], []>} : vector<8x128xbf16>, vector<128x128xbf16>, vector<8x128xf32> -> vector<8x128xf32>
    %56 = arith.addf %48, %55 : vector<8x128xf32>
    %c2_50 = arith.constant 2 : index
    %c0_51 = arith.constant 0 : index
    %c0_52 = arith.constant 0 : index
    %57 = vector.load %arg6[%c2_50, %c0_51, %c0_52] : memref<4x8x16xbf16, #tpu.memory_space<vmem>>, vector<1x8x16xbf16>
    %58 = vector.shape_cast %57 : vector<1x8x16xbf16> to vector<8x16xbf16>
    %cst_53 = arith.constant dense<0.000000e+00> : vector<8x128xf32>
    %59 = tpu.matmul %58, %41, %cst_53 {dimension_numbers = #tpu.dot_dimension_numbers<[1], [0], [0], [1], [0, 0, 1, 1], [], []>} : vector<8x16xbf16>, vector<16x128xbf16>, vector<8x128xf32> -> vector<8x128xf32>
    %60 = arith.truncf %59 : vector<8x128xf32> to vector<8x128xbf16>
    %c2_54 = arith.constant 2 : index
    %c0_55 = arith.constant 0 : index
    %c0_56 = arith.constant 0 : index
    %61 = vector.load %arg5[%c2_54, %c0_55, %c0_56] : memref<4x128x128xbf16, #tpu.memory_space<vmem>>, vector<1x128x128xbf16>
    %62 = vector.shape_cast %61 : vector<1x128x128xbf16> to vector<128x128xbf16>
    %cst_57 = arith.constant dense<0.000000e+00> : vector<8x128xf32>
    %63 = tpu.matmul %60, %62, %cst_57 {dimension_numbers = #tpu.dot_dimension_numbers<[1], [0], [0], [1], [0, 0, 1, 1], [], []>} : vector<8x128xbf16>, vector<128x128xbf16>, vector<8x128xf32> -> vector<8x128xf32>
    %64 = arith.addf %56, %63 : vector<8x128xf32>
    %c3_58 = arith.constant 3 : index
    %c0_59 = arith.constant 0 : index
    %c0_60 = arith.constant 0 : index
    %65 = vector.load %arg6[%c3_58, %c0_59, %c0_60] : memref<4x8x16xbf16, #tpu.memory_space<vmem>>, vector<1x8x16xbf16>
    %66 = vector.shape_cast %65 : vector<1x8x16xbf16> to vector<8x16xbf16>
    %cst_61 = arith.constant dense<0.000000e+00> : vector<8x128xf32>
    %67 = tpu.matmul %66, %41, %cst_61 {dimension_numbers = #tpu.dot_dimension_numbers<[1], [0], [0], [1], [0, 0, 1, 1], [], []>} : vector<8x16xbf16>, vector<16x128xbf16>, vector<8x128xf32> -> vector<8x128xf32>
    %68 = arith.truncf %67 : vector<8x128xf32> to vector<8x128xbf16>
    %c3_62 = arith.constant 3 : index
    %c0_63 = arith.constant 0 : index
    %c0_64 = arith.constant 0 : index
    %69 = vector.load %arg5[%c3_62, %c0_63, %c0_64] : memref<4x128x128xbf16, #tpu.memory_space<vmem>>, vector<1x128x128xbf16>
    %70 = vector.shape_cast %69 : vector<1x128x128xbf16> to vector<128x128xbf16>
    %cst_65 = arith.constant dense<0.000000e+00> : vector<8x128xf32>
    %71 = tpu.matmul %68, %70, %cst_65 {dimension_numbers = #tpu.dot_dimension_numbers<[1], [0], [0], [1], [0, 0, 1, 1], [], []>} : vector<8x128xbf16>, vector<128x128xbf16>, vector<8x128xf32> -> vector<8x128xf32>
    %72 = arith.addf %64, %71 : vector<8x128xf32>
    %c0_66 = arith.constant 0 : index
    %c0_67 = arith.constant 0 : index
    %73 = vector.load %arg7[%c0_66, %c0_67] : memref<1x128xf32, #tpu.memory_space<vmem>>, vector<1x128xf32>
    %74 = vector.broadcast %73 : vector<1x128xf32> to vector<8x128xf32>
    %75 = arith.addf %72, %74 : vector<8x128xf32>
    %cst_68 = arith.constant 0.000000e+00 : f32
    %76 = vector.broadcast %cst_68 : f32 to vector<8x128xf32>
    %77 = arith.cmpf ogt, %75, %76 : vector<8x128xf32>
    %cst_69 = arith.constant 2.000000e-01 : f32
    %78 = vector.broadcast %cst_69 : f32 to vector<8x128xf32>
    %79 = arith.mulf %78, %75 : vector<8x128xf32>
    %80 = arith.select %77, %75, %79 : vector<8x128xi1>, vector<8x128xf32>
    %81 = arith.truncf %80 : vector<8x128xf32> to vector<8x128xbf16>
    %c0_70 = arith.constant 0 : index
    %c0_71 = arith.constant 0 : index
    %c0_72 = arith.constant 0 : index
    %82 = vector.load %arg9[%c0_70, %c0_71, %c0_72] : memref<4x8x8xbf16, #tpu.memory_space<vmem>>, vector<1x8x8xbf16>
    %83 = vector.shape_cast %82 : vector<1x8x8xbf16> to vector<8x8xbf16>
    %cst_73 = arith.constant dense<0.000000e+00> : vector<8x128xf32>
    %84 = tpu.matmul %83, %81, %cst_73 {dimension_numbers = #tpu.dot_dimension_numbers<[1], [0], [0], [1], [0, 0, 1, 1], [], []>} : vector<8x8xbf16>, vector<8x128xbf16>, vector<8x128xf32> -> vector<8x128xf32>
    %85 = arith.truncf %84 : vector<8x128xf32> to vector<8x128xbf16>
    %c0_74 = arith.constant 0 : index
    %c0_75 = arith.constant 0 : index
    %c0_76 = arith.constant 0 : index
    %86 = vector.load %arg8[%c0_74, %c0_75, %c0_76] : memref<4x128x128xbf16, #tpu.memory_space<vmem>>, vector<1x128x128xbf16>
    %87 = vector.shape_cast %86 : vector<1x128x128xbf16> to vector<128x128xbf16>
    %cst_77 = arith.constant dense<0.000000e+00> : vector<8x128xf32>
    %88 = tpu.matmul %85, %87, %cst_77 {dimension_numbers = #tpu.dot_dimension_numbers<[1], [0], [0], [1], [0, 0, 1, 1], [], []>} : vector<8x128xbf16>, vector<128x128xbf16>, vector<8x128xf32> -> vector<8x128xf32>
    %c1_78 = arith.constant 1 : index
    %c0_79 = arith.constant 0 : index
    %c0_80 = arith.constant 0 : index
    %89 = vector.load %arg9[%c1_78, %c0_79, %c0_80] : memref<4x8x8xbf16, #tpu.memory_space<vmem>>, vector<1x8x8xbf16>
    %90 = vector.shape_cast %89 : vector<1x8x8xbf16> to vector<8x8xbf16>
    %cst_81 = arith.constant dense<0.000000e+00> : vector<8x128xf32>
    %91 = tpu.matmul %90, %81, %cst_81 {dimension_numbers = #tpu.dot_dimension_numbers<[1], [0], [0], [1], [0, 0, 1, 1], [], []>} : vector<8x8xbf16>, vector<8x128xbf16>, vector<8x128xf32> -> vector<8x128xf32>
    %92 = arith.truncf %91 : vector<8x128xf32> to vector<8x128xbf16>
    %c1_82 = arith.constant 1 : index
    %c0_83 = arith.constant 0 : index
    %c0_84 = arith.constant 0 : index
    %93 = vector.load %arg8[%c1_82, %c0_83, %c0_84] : memref<4x128x128xbf16, #tpu.memory_space<vmem>>, vector<1x128x128xbf16>
    %94 = vector.shape_cast %93 : vector<1x128x128xbf16> to vector<128x128xbf16>
    %cst_85 = arith.constant dense<0.000000e+00> : vector<8x128xf32>
    %95 = tpu.matmul %92, %94, %cst_85 {dimension_numbers = #tpu.dot_dimension_numbers<[1], [0], [0], [1], [0, 0, 1, 1], [], []>} : vector<8x128xbf16>, vector<128x128xbf16>, vector<8x128xf32> -> vector<8x128xf32>
    %96 = arith.addf %88, %95 : vector<8x128xf32>
    %c2_86 = arith.constant 2 : index
    %c0_87 = arith.constant 0 : index
    %c0_88 = arith.constant 0 : index
    %97 = vector.load %arg9[%c2_86, %c0_87, %c0_88] : memref<4x8x8xbf16, #tpu.memory_space<vmem>>, vector<1x8x8xbf16>
    %98 = vector.shape_cast %97 : vector<1x8x8xbf16> to vector<8x8xbf16>
    %cst_89 = arith.constant dense<0.000000e+00> : vector<8x128xf32>
    %99 = tpu.matmul %98, %81, %cst_89 {dimension_numbers = #tpu.dot_dimension_numbers<[1], [0], [0], [1], [0, 0, 1, 1], [], []>} : vector<8x8xbf16>, vector<8x128xbf16>, vector<8x128xf32> -> vector<8x128xf32>
    %100 = arith.truncf %99 : vector<8x128xf32> to vector<8x128xbf16>
    %c2_90 = arith.constant 2 : index
    %c0_91 = arith.constant 0 : index
    %c0_92 = arith.constant 0 : index
    %101 = vector.load %arg8[%c2_90, %c0_91, %c0_92] : memref<4x128x128xbf16, #tpu.memory_space<vmem>>, vector<1x128x128xbf16>
    %102 = vector.shape_cast %101 : vector<1x128x128xbf16> to vector<128x128xbf16>
    %cst_93 = arith.constant dense<0.000000e+00> : vector<8x128xf32>
    %103 = tpu.matmul %100, %102, %cst_93 {dimension_numbers = #tpu.dot_dimension_numbers<[1], [0], [0], [1], [0, 0, 1, 1], [], []>} : vector<8x128xbf16>, vector<128x128xbf16>, vector<8x128xf32> -> vector<8x128xf32>
    %104 = arith.addf %96, %103 : vector<8x128xf32>
    %c3_94 = arith.constant 3 : index
    %c0_95 = arith.constant 0 : index
    %c0_96 = arith.constant 0 : index
    %105 = vector.load %arg9[%c3_94, %c0_95, %c0_96] : memref<4x8x8xbf16, #tpu.memory_space<vmem>>, vector<1x8x8xbf16>
    %106 = vector.shape_cast %105 : vector<1x8x8xbf16> to vector<8x8xbf16>
    %cst_97 = arith.constant dense<0.000000e+00> : vector<8x128xf32>
    %107 = tpu.matmul %106, %81, %cst_97 {dimension_numbers = #tpu.dot_dimension_numbers<[1], [0], [0], [1], [0, 0, 1, 1], [], []>} : vector<8x8xbf16>, vector<8x128xbf16>, vector<8x128xf32> -> vector<8x128xf32>
    %108 = arith.truncf %107 : vector<8x128xf32> to vector<8x128xbf16>
    %c3_98 = arith.constant 3 : index
    %c0_99 = arith.constant 0 : index
    %c0_100 = arith.constant 0 : index
    %109 = vector.load %arg8[%c3_98, %c0_99, %c0_100] : memref<4x128x128xbf16, #tpu.memory_space<vmem>>, vector<1x128x128xbf16>
    %110 = vector.shape_cast %109 : vector<1x128x128xbf16> to vector<128x128xbf16>
    %cst_101 = arith.constant dense<0.000000e+00> : vector<8x128xf32>
    %111 = tpu.matmul %108, %110, %cst_101 {dimension_numbers = #tpu.dot_dimension_numbers<[1], [0], [0], [1], [0, 0, 1, 1], [], []>} : vector<8x128xbf16>, vector<128x128xbf16>, vector<8x128xf32> -> vector<8x128xf32>
    %112 = arith.addf %104, %111 : vector<8x128xf32>
    %c0_102 = arith.constant 0 : index
    %c0_103 = arith.constant 0 : index
    %113 = vector.load %arg10[%c0_102, %c0_103] : memref<1x128xf32, #tpu.memory_space<vmem>>, vector<1x128xf32>
    %114 = vector.broadcast %113 : vector<1x128xf32> to vector<8x128xf32>
    %115 = arith.addf %112, %114 : vector<8x128xf32>
    %cst_104 = arith.constant 0.000000e+00 : f32
    %116 = vector.broadcast %cst_104 : f32 to vector<8x128xf32>
    %117 = arith.cmpf ogt, %115, %116 : vector<8x128xf32>
    %cst_105 = arith.constant 2.000000e-01 : f32
    %118 = vector.broadcast %cst_105 : f32 to vector<8x128xf32>
    %119 = arith.mulf %118, %115 : vector<8x128xf32>
    %120 = arith.select %117, %115, %119 : vector<8x128xi1>, vector<8x128xf32>
    %121 = arith.truncf %120 : vector<8x128xf32> to vector<8x128xbf16>
    %c0_106 = arith.constant 0 : index
    %c0_107 = arith.constant 0 : index
    %c0_108 = arith.constant 0 : index
    %122 = vector.load %arg12[%c0_106, %c0_107, %c0_108] : memref<4x8x8xbf16, #tpu.memory_space<vmem>>, vector<1x8x8xbf16>
    %123 = vector.shape_cast %122 : vector<1x8x8xbf16> to vector<8x8xbf16>
    %cst_109 = arith.constant dense<0.000000e+00> : vector<8x128xf32>
    %124 = tpu.matmul %123, %121, %cst_109 {dimension_numbers = #tpu.dot_dimension_numbers<[1], [0], [0], [1], [0, 0, 1, 1], [], []>} : vector<8x8xbf16>, vector<8x128xbf16>, vector<8x128xf32> -> vector<8x128xf32>
    %125 = arith.truncf %124 : vector<8x128xf32> to vector<8x128xbf16>
    %c0_110 = arith.constant 0 : index
    %c0_111 = arith.constant 0 : index
    %c0_112 = arith.constant 0 : index
    %126 = vector.load %arg11[%c0_110, %c0_111, %c0_112] : memref<4x128x128xbf16, #tpu.memory_space<vmem>>, vector<1x128x128xbf16>
    %127 = vector.shape_cast %126 : vector<1x128x128xbf16> to vector<128x128xbf16>
    %cst_113 = arith.constant dense<0.000000e+00> : vector<8x128xf32>
    %128 = tpu.matmul %125, %127, %cst_113 {dimension_numbers = #tpu.dot_dimension_numbers<[1], [0], [0], [1], [0, 0, 1, 1], [], []>} : vector<8x128xbf16>, vector<128x128xbf16>, vector<8x128xf32> -> vector<8x128xf32>
    %c1_114 = arith.constant 1 : index
    %c0_115 = arith.constant 0 : index
    %c0_116 = arith.constant 0 : index
    %129 = vector.load %arg12[%c1_114, %c0_115, %c0_116] : memref<4x8x8xbf16, #tpu.memory_space<vmem>>, vector<1x8x8xbf16>
    %130 = vector.shape_cast %129 : vector<1x8x8xbf16> to vector<8x8xbf16>
    %cst_117 = arith.constant dense<0.000000e+00> : vector<8x128xf32>
    %131 = tpu.matmul %130, %121, %cst_117 {dimension_numbers = #tpu.dot_dimension_numbers<[1], [0], [0], [1], [0, 0, 1, 1], [], []>} : vector<8x8xbf16>, vector<8x128xbf16>, vector<8x128xf32> -> vector<8x128xf32>
    %132 = arith.truncf %131 : vector<8x128xf32> to vector<8x128xbf16>
    %c1_118 = arith.constant 1 : index
    %c0_119 = arith.constant 0 : index
    %c0_120 = arith.constant 0 : index
    %133 = vector.load %arg11[%c1_118, %c0_119, %c0_120] : memref<4x128x128xbf16, #tpu.memory_space<vmem>>, vector<1x128x128xbf16>
    %134 = vector.shape_cast %133 : vector<1x128x128xbf16> to vector<128x128xbf16>
    %cst_121 = arith.constant dense<0.000000e+00> : vector<8x128xf32>
    %135 = tpu.matmul %132, %134, %cst_121 {dimension_numbers = #tpu.dot_dimension_numbers<[1], [0], [0], [1], [0, 0, 1, 1], [], []>} : vector<8x128xbf16>, vector<128x128xbf16>, vector<8x128xf32> -> vector<8x128xf32>
    %136 = arith.addf %128, %135 : vector<8x128xf32>
    %c2_122 = arith.constant 2 : index
    %c0_123 = arith.constant 0 : index
    %c0_124 = arith.constant 0 : index
    %137 = vector.load %arg12[%c2_122, %c0_123, %c0_124] : memref<4x8x8xbf16, #tpu.memory_space<vmem>>, vector<1x8x8xbf16>
    %138 = vector.shape_cast %137 : vector<1x8x8xbf16> to vector<8x8xbf16>
    %cst_125 = arith.constant dense<0.000000e+00> : vector<8x128xf32>
    %139 = tpu.matmul %138, %121, %cst_125 {dimension_numbers = #tpu.dot_dimension_numbers<[1], [0], [0], [1], [0, 0, 1, 1], [], []>} : vector<8x8xbf16>, vector<8x128xbf16>, vector<8x128xf32> -> vector<8x128xf32>
    %140 = arith.truncf %139 : vector<8x128xf32> to vector<8x128xbf16>
    %c2_126 = arith.constant 2 : index
    %c0_127 = arith.constant 0 : index
    %c0_128 = arith.constant 0 : index
    %141 = vector.load %arg11[%c2_126, %c0_127, %c0_128] : memref<4x128x128xbf16, #tpu.memory_space<vmem>>, vector<1x128x128xbf16>
    %142 = vector.shape_cast %141 : vector<1x128x128xbf16> to vector<128x128xbf16>
    %cst_129 = arith.constant dense<0.000000e+00> : vector<8x128xf32>
    %143 = tpu.matmul %140, %142, %cst_129 {dimension_numbers = #tpu.dot_dimension_numbers<[1], [0], [0], [1], [0, 0, 1, 1], [], []>} : vector<8x128xbf16>, vector<128x128xbf16>, vector<8x128xf32> -> vector<8x128xf32>
    %144 = arith.addf %136, %143 : vector<8x128xf32>
    %c3_130 = arith.constant 3 : index
    %c0_131 = arith.constant 0 : index
    %c0_132 = arith.constant 0 : index
    %145 = vector.load %arg12[%c3_130, %c0_131, %c0_132] : memref<4x8x8xbf16, #tpu.memory_space<vmem>>, vector<1x8x8xbf16>
    %146 = vector.shape_cast %145 : vector<1x8x8xbf16> to vector<8x8xbf16>
    %cst_133 = arith.constant dense<0.000000e+00> : vector<8x128xf32>
    %147 = tpu.matmul %146, %121, %cst_133 {dimension_numbers = #tpu.dot_dimension_numbers<[1], [0], [0], [1], [0, 0, 1, 1], [], []>} : vector<8x8xbf16>, vector<8x128xbf16>, vector<8x128xf32> -> vector<8x128xf32>
    %148 = arith.truncf %147 : vector<8x128xf32> to vector<8x128xbf16>
    %c3_134 = arith.constant 3 : index
    %c0_135 = arith.constant 0 : index
    %c0_136 = arith.constant 0 : index
    %149 = vector.load %arg11[%c3_134, %c0_135, %c0_136] : memref<4x128x128xbf16, #tpu.memory_space<vmem>>, vector<1x128x128xbf16>
    %150 = vector.shape_cast %149 : vector<1x128x128xbf16> to vector<128x128xbf16>
    %cst_137 = arith.constant dense<0.000000e+00> : vector<8x128xf32>
    %151 = tpu.matmul %148, %150, %cst_137 {dimension_numbers = #tpu.dot_dimension_numbers<[1], [0], [0], [1], [0, 0, 1, 1], [], []>} : vector<8x128xbf16>, vector<128x128xbf16>, vector<8x128xf32> -> vector<8x128xf32>
    %152 = arith.addf %144, %151 : vector<8x128xf32>
    %c0_138 = arith.constant 0 : index
    %c0_139 = arith.constant 0 : index
    %153 = vector.load %arg13[%c0_138, %c0_139] : memref<1x128xf32, #tpu.memory_space<vmem>>, vector<1x128xf32>
    %154 = vector.broadcast %153 : vector<1x128xf32> to vector<8x128xf32>
    %155 = arith.addf %152, %154 : vector<8x128xf32>
    %156 = arith.negf %155 : vector<8x128xf32>
    %157 = math.exp %156 : vector<8x128xf32>
    %cst_140 = arith.constant 1.000000e+00 : f32
    %158 = vector.broadcast %cst_140 : f32 to vector<8x128xf32>
    %159 = arith.addf %158, %157 : vector<8x128xf32>
    %160 = arith.divf %158, %159 : vector<8x128xf32>
    %c0_141 = arith.constant 0 : index
    %c0_142 = arith.constant 0 : index
    %c0_143 = arith.constant 0 : index
    %161 = vector.load %arg14[%c0_141, %c0_142, %c0_143] : memref<1x8x128xf32, #tpu.memory_space<vmem>>, vector<1x8x128xf32>
    %162 = vector.shape_cast %161 : vector<1x8x128xf32> to vector<8x128xf32>
    %163 = vector.shape_cast %160 : vector<8x128xf32> to vector<1x8x128xf32>
    tpu.vector_store %arg14[%c0_141, %c0_142, %c0_143], %163 {strides = array<i32>} : memref<1x8x128xf32, #tpu.memory_space<vmem>>, vector<1x8x128xf32>,
    return
  }
  func.func @transform_0(%arg0: i32) -> (i32, i32, i32) {
    %c0_i32 = arith.constant 0 : i32
    %c0_i32_0 = arith.constant 0 : i32
    %c0_i32_1 = arith.constant 0 : i32
    return %arg0, %c0_i32, %c0_i32_0 : i32, i32, i32
  }
  func.func @transform_1(%arg0: i32) -> (i32, i32, i32) {
    %c0_i32 = arith.constant 0 : i32
    %c0_i32_0 = arith.constant 0 : i32
    %c0_i32_1 = arith.constant 0 : i32
    %c0_i32_2 = arith.constant 0 : i32
    return %c0_i32, %c0_i32_0, %c0_i32_1 : i32, i32, i32
  }
  func.func @transform_2(%arg0: i32) -> (i32, i32, i32) {
    %c0_i32 = arith.constant 0 : i32
    %c0_i32_0 = arith.constant 0 : i32
    %c0_i32_1 = arith.constant 0 : i32
    %c0_i32_2 = arith.constant 0 : i32
    return %c0_i32, %c0_i32_0, %c0_i32_1 : i32, i32, i32
  }
  func.func @transform_3(%arg0: i32) -> (i32, i32) {
    %c0_i32 = arith.constant 0 : i32
    %c0_i32_0 = arith.constant 0 : i32
    %c0_i32_1 = arith.constant 0 : i32
    return %c0_i32, %c0_i32_0 : i32, i32
  }
  func.func @transform_4(%arg0: i32) -> (i32, i32, i32) {
    %c0_i32 = arith.constant 0 : i32
    %c0_i32_0 = arith.constant 0 : i32
    %c0_i32_1 = arith.constant 0 : i32
    %c0_i32_2 = arith.constant 0 : i32
    return %c0_i32, %c0_i32_0, %c0_i32_1 : i32, i32, i32
  }
  func.func @transform_5(%arg0: i32) -> (i32, i32, i32) {
    %c0_i32 = arith.constant 0 : i32
    %c0_i32_0 = arith.constant 0 : i32
    %c0_i32_1 = arith.constant 0 : i32
    %c0_i32_2 = arith.constant 0 : i32
    return %c0_i32, %c0_i32_0, %c0_i32_1 : i32, i32, i32
  }
  func.func @transform_6(%arg0: i32) -> (i32, i32) {
    %c0_i32 = arith.constant 0 : i32
    %c0_i32_0 = arith.constant 0 : i32
    %c0_i32_1 = arith.constant 0 : i32
    return %c0_i32, %c0_i32_0 : i32, i32
  }
  func.func @transform_7(%arg0: i32) -> (i32, i32, i32) {
    %c0_i32 = arith.constant 0 : i32
    %c0_i32_0 = arith.constant 0 : i32
    %c0_i32_1 = arith.constant 0 : i32
    %c0_i32_2 = arith.constant 0 : i32
    return %c0_i32, %c0_i32_0, %c0_i32_1 : i32, i32, i32
  }
  func.func @transform_8(%arg0: i32) -> (i32, i32, i32) {
    %c0_i32 = arith.constant 0 : i32
    %c0_i32_0 = arith.constant 0 : i32
    %c0_i32_1 = arith.constant 0 : i32
    %c0_i32_2 = arith.constant 0 : i32
    return %c0_i32, %c0_i32_0, %c0_i32_1 : i32, i32, i32
  }
  func.func @transform_9(%arg0: i32) -> (i32, i32) {
    %c0_i32 = arith.constant 0 : i32
    %c0_i32_0 = arith.constant 0 : i32
    %c0_i32_1 = arith.constant 0 : i32
    return %c0_i32, %c0_i32_0 : i32, i32
  }
  func.func @transform_10(%arg0: i32) -> (i32, i32, i32) {
    %c0_i32 = arith.constant 0 : i32
    %c0_i32_0 = arith.constant 0 : i32
    %c0_i32_1 = arith.constant 0 : i32
    %c0_i32_2 = arith.constant 0 : i32
    return %c0_i32, %c0_i32_0, %c0_i32_1 : i32, i32, i32
  }
  func.func @transform_11(%arg0: i32) -> (i32, i32, i32) {
    %c0_i32 = arith.constant 0 : i32
    %c0_i32_0 = arith.constant 0 : i32
    %c0_i32_1 = arith.constant 0 : i32
    %c0_i32_2 = arith.constant 0 : i32
    return %c0_i32, %c0_i32_0, %c0_i32_1 : i32, i32, i32
  }
  func.func @transform_12(%arg0: i32) -> (i32, i32) {
    %c0_i32 = arith.constant 0 : i32
    %c0_i32_0 = arith.constant 0 : i32
    %c0_i32_1 = arith.constant 0 : i32
    return %c0_i32, %c0_i32_0 : i32, i32
  }
  func.func @transform_13(%arg0: i32) -> (i32, i32, i32) {
    %c0_i32 = arith.constant 0 : i32
    %c0_i32_0 = arith.constant 0 : i32
    %c0_i32_1 = arith.constant 0 : i32
    return %arg0, %c0_i32, %c0_i32_0 : i32, i32, i32
  }
}

</mosaic_0001>

<bundles_post_ra>
// kernel: tile.18
= control target key start
LH: loop header
LB: loop body
LE: loop exit
PB: predicated region body
PF: predicated region fallthrough
CT: control target
= control target key end

     0   :  { %s28_s0 = inlined_call_operand.vmem [shape: f32[8], index: 0, kind: input, shape index: {}]   ;;  %s29_s1 = inlined_call_operand.vmem [shape: f32[16,8], index: 1, kind: output, shape index: {}]  }
   0x1   :  { %v4_v0 = vld [vmem:[%s28_s0] ss:$0 sm:$0xff] }
   0x2   :  { %5 = vst [vmem:[%s29_s1] sm:$0xff] %v4_v0  ;;  %8 = vst [vmem:[%s29_s1 + $0x8] sm:$0xff] %v4_v0 }

// kernel: tile.23
= control target key start
LH: loop header
LB: loop body
LE: loop exit
PB: predicated region body
PF: predicated region fallthrough
CT: control target
= control target key end

     0   :  { %s22_s0 = inlined_call_operand.vmem [shape: f32[16], index: 0, kind: input, shape index: {}]   ;;  %s23_s1 = inlined_call_operand.vmem [shape: f32[8,16], index: 1, kind: output, shape index: {}]  }
   0x1   :  { %v4_v0 = vld [vmem:[%s22_s0] ss:$0 sm:$0xff] }
   0x2   :  { %5 = vst [vmem:[%s23_s1] sm:$0xff] %v4_v0 }

// kernel: tile.28
= control target key start
LH: loop header
LB: loop body
LE: loop exit
PB: predicated region body
PF: predicated region fallthrough
CT: control target
= control target key end

     0   :  { %s22_s0 = inlined_call_operand.vmem [shape: f32[32], index: 0, kind: input, shape index: {}]   ;;  %s23_s1 = inlined_call_operand.vmem [shape: f32[4,32], index: 1, kind: output, shape index: {}]  }
   0x1   :  { %v4_v0 = vld [vmem:[%s22_s0] ss:$0 sm:$0xff] }
   0x2   :  { %5 = vst [vmem:[%s23_s1] sm:$0xf] %v4_v0 }

// kernel: discriminator_forward.1
= control target key start
LH: loop header
LB: loop body
LE: loop exit
PB: predicated region body
PF: predicated region fallthrough
CT: control target
= control target key end

     0   :  { %s4229_s25 = smov 0   ;;  %s4954_s0 = inlined_call_operand.vmem [shape: bf16[2,32,128], index: 0, kind: input, shape index: {}]   ;;  %s4955_s1 = inlined_call_operand.vmem [shape: bf16[4,128,128], index: 1, kind: input, shape index: {}]   ;;  %s4956_s2 = inlined_call_operand.vmem [shape: bf16[4,16,32], index: 2, kind: input, shape index: {}]   ;;  %s4957_s3 = inlined_call_operand.vmem [shape: f32[1,128], index: 3, kind: input, shape index: {}]   ;;  %s4958_s4 = inlined_call_operand.vmem [shape: bf16[4,128,128], index: 4, kind: input, shape index: {}]   ;;  %s4959_s5 = inlined_call_operand.vmem [shape: bf16[4,8,16], index: 5, kind: input, shape index: {}]   ;;  %s4960_s6 = inlined_call_operand.vmem [shape: f32[1,128], index: 6, kind: input, shape index: {}]   ;;  %s4961_s7 = inlined_call_operand.vmem [shape: bf16[4,128,128], index: 7, kind: input, shape index: {}]   ;;  %s4962_s8 = inlined_call_operand.vmem [shape: bf16[4,8,8], index: 8, kind: input, shape index: {}]   ;;  %s4963_s9 = inlined_call_operand.vmem [shape: f32[1,128], index: 9, kind: input, shape index: {}]   ;;  %s4964_s10 = inlined_call_operand.vmem [shape: bf16[4,128,128], index: 10, kind: input, shape index: {}]   ;;  %s4965_s11 = inlined_call_operand.vmem [shape: bf16[4,8,8], index: 11, kind: input, shape index: {}]   ;;  %s4966_s12 = inlined_call_operand.vmem [shape: f32[1,128], index: 12, kind: input, shape index: {}]   ;;  %s4967_s13 = inlined_call_operand.vmem [shape: f32[2,8,128], index: 13, kind: output, shape index: {}]  }
   0x1 LB: > { %s3024_s26 = sadd.s32 4294967295, %s4155_s25   ;;  %p3028_p0 = scmp.ge.s32.totalorder %s4155_s25, 1  ;;  %s4155_s25 = sphi %s4229_s25, %s23_s25  }
   0x2   : > { %p387_p1 = scmp.lt.s32.totalorder %s4155_s25, 3 }
   0x4   : > { %p388_p2 = pnand %p3028_p0, %p387_p1 }
   0x5   : > { %p430_p3 = scmp.lt.s32.totalorder (!%p388_p2), %s3024_s26, 1  ;;  %v4157_v0 = vmov (!%p388_p2), 0.0   ;;  %vm4158_vm0 = vmmov (!%p388_p2), 0   ;;  %v4017_v1 = vld [vmem:[%s4955_s1 + $0x40] sm:$0xff] (!%p388_p2)   ;;  %v4019_v4 = vld [vmem:[%s4955_s1 + $0x48] sm:$0xff] (!%p388_p2)   ;;  %v4021_v6 = vld [vmem:[%s4955_s1 + $0x50] sm:$0xff] (!%p388_p2)  }
   0x6   : > { %391 = sbr.rel (%p388_p2) target bundleno = 2755 (0xac3), region = 72  ;;  %3577 = vmatprep.subr.bf16.mxu1 (!%p388_p2), %v4157_v0  ;;  %3581 = vmatprep.mubr.msk.bf16.mxu1 (!%p388_p2), %vm4158_vm0, %v4157_v0  ;;  %v4013_v5 = vld [vmem:[%s4956_s2] sm:$0xff] (!%p388_p2)   ;;  %vm463_vm1 = vcmask (!%p388_p2), 261120   ;;  %v4023_v7 = vld [vmem:[%s4955_s1 + $0x58] sm:$0xff] (!%p388_p2)   ;;  %v4014_v8 = vld [vmem:[%s4956_s2 + $0x8] sm:$0xff] (!%p388_p2)   ;;  %vm1112_vm4 = vcmask (!%p388_p2), 130048  }
   0x7   : > { %3593 = vmatprep.subr.bf16.mxu0 (!%p388_p2), %v4157_v0  ;;  %3609 = vmatprep.mubr.msk.bf16.mxu0 (!%p388_p2), %vm4158_vm0, %v4157_v0  ;;  %v4025_v9 = vld [vmem:[%s4955_s1 + $0x60] sm:$0xff] (!%p388_p2)   ;;  %v4016_v11 = vld [vmem:[%s4955_s1 + $0x8] sm:$0xff] (!%p388_p2)   ;;  %v4018_v12 = vld [vmem:[%s4955_s1 + $0x10] sm:$0xff] (!%p388_p2)   ;;  %vm1733_vm6 = vcmask (!%p388_p2), 1043456   ;;  %vm1729_vm7 = vcmask (!%p388_p2), 64512  }
   0x8   : > { %3594 = vmatpush3.bf16.msra.mxu0 (!%p388_p2), %v4017_v1  ;;  %v4015_v10 = vld [vmem:[%s4955_s1] sm:$0xff] (!%p388_p2)   ;;  %v4020_v13 = vld [vmem:[%s4955_s1 + $0x18] sm:$0xff] (!%p388_p2)   ;;  %v4024_v15 = vld [vmem:[%s4955_s1 + $0x28] sm:$0xff] (!%p388_p2)  }
   0x9   : > { %3595 = vmatprep.subr.bf16.mxu0 (!%p388_p2), %v4157_v0  ;;  %v4022_v14 = vld [vmem:[%s4955_s1 + $0x20] sm:$0xff] (!%p388_p2)   ;;  %v4026_v16 = vld [vmem:[%s4955_s1 + $0x30] sm:$0xff] (!%p388_p2)   ;;  %v4027_v17 = vld [vmem:[%s4955_s1 + $0x68] sm:$0xff] (!%p388_p2)  }
   0xa   : > { %v4028_v18 = vld [vmem:[%s4955_s1 + $0x38] sm:$0xff] (!%p388_p2)   ;;  %v4029_v19 = vld [vmem:[%s4955_s1 + $0x70] sm:$0xff] (!%p388_p2)   ;;  %v4033_v24 = vld [vmem:[%s4955_s1 + $0x80] sm:$0xff] (!%p388_p2)  }
   0xb   : > { %v4030_v20 = vld [vmem:[%s4955_s1 + $0x78] sm:$0xff] (!%p388_p2)   ;;  %v4034_v27 = vld [vmem:[%s4955_s1 + $0x88] sm:$0xff] (!%p388_p2)   ;;  %v4035_v33 = vld [vmem:[%s4955_s1 + $0x90] sm:$0xff] (!%p388_p2)  }
   0xc   : > { %3596 = vmatpush3.bf16.msra.mxu0 (!%p388_p2), %v4019_v4  ;;  %v4031_v34 = vld [vmem:[%s4956_s2 + $0x10] sm:$0xff] (!%p388_p2)   ;;  %v4032_v35 = vld [vmem:[%s4956_s2 + $0x18] sm:$0xff] (!%p388_p2)   ;;  %v4036_v36 = vld [vmem:[%s4955_s1 + $0xc0] sm:$0xff] (!%p388_p2)  }
   0xd   : > { %s4969_s26 = smov (!%p430_p3, %s3024_s26), 1  ;;  %3597 = vmatprep.subr.bf16.mxu0 %v4157_v0  ;;  %v4037_v37 = vld [vmem:[%s4955_s1 + $0x98] sm:$0xff]   ;;  %v4038_v38 = vld [vmem:[%s4955_s1 + $0xc8] sm:$0xff]   ;;  %v4039_v39 = vld [vmem:[%s4955_s1 + $0xa0] sm:$0xff]  }
   0xe   : > { %s3396_s27 = sshll.u32 %s4969_s26, 4  ;;  %v4040_v40 = vld [vmem:[%s4955_s1 + $0xd0] sm:$0xff]   ;;  %v4041_v41 = vld [vmem:[%s4955_s1 + $0xa8] sm:$0xff]   ;;  %v4042_v42 = vld [vmem:[%s4955_s1 + $0xd8] sm:$0xff]  }
   0xf   : > { %s434_s15 = scalar_lea.vmem %s4954_s0, %s3396_s27  ;;  %v4043_v43 = vld [vmem:[%s4955_s1 + $0xb0] sm:$0xff]   ;;  %v4044_v44 = vld [vmem:[%s4955_s1 + $0xe0] sm:$0xff]   ;;  %v4045_v45 = vld [vmem:[%s4955_s1 + $0xb8] sm:$0xff]   ;;  %s3031_s27 = sshll.u32 %s4969_s26, 3 }
  0x10   : > { %v4252_v2 = vld [vmem:[%s434_s15] sm:$0xff]   ;;  %v4256_v3 = vld [vmem:[%s434_s15 + $0x8] sm:$0xff]   ;;  %3598 = vmatpush3.bf16.msra.mxu0 %v4021_v6  ;;  %v4047_v47 = vld [vmem:[%s4955_s1 + $0xf0] sm:$0xff]   ;;  %s438_s30 = scalar_lea.vmem %s4967_s13, %s3031_s27 }
  0x11   : > { %3578 = vmatpush3.bf16.msra.mxu1 %v4252_v2  ;;  %3599 = vmatprep.subr.bf16.mxu0 %v4157_v0  ;;  %v4046_v46 = vld [vmem:[%s4955_s1 + $0xe8] sm:$0xff]   ;;  %v4048_v48 = vld [vmem:[%s4955_s1 + $0xf8] sm:$0xff]   ;;  %v4051_v6 = vld [vmem:[%s4958_s4 + $0x40] sm:$0xff]  }
  0x12   : > { %3579 = vmatprep.subr.bf16.mxu1 %v4157_v0 }
  0x14   : > { %3600 = vmatpush3.bf16.msra.mxu0 %v4023_v7  ;;  %v4053_v7 = vld [vmem:[%s4958_s4 + $0x48] sm:$0xff]  }
  0x15   : > { %3580 = vmatpush3.bf16.msra.mxu1 %v4256_v3  ;;  %3601 = vmatprep.subr.bf16.mxu0 %v4157_v0 }
  0x16   : > { %3585 = vmatprep.subr.bf16.mxu1 %v4157_v0 }
  0x18   : > { %3582 = vmatmul.mubr.msk.bf16.vlgmr.msra.gmra.mrb[0].mxu1 %vm463_vm1, %v4013_v5  ;;  %3602 = vmatpush3.bf16.msra.mxu0 %v4025_v9  ;;  %v4057_v9 = vld [vmem:[%s4958_s4 + $0x58] sm:$0xff]  }
  0x19   : > { %3586 = vmatpush3.bf16.msra.mxu1 %v4252_v2  ;;  %3589 = vmatprep.mubr.msk.bf16.mxu1 %vm4158_vm0, %v4157_v0 }
  0x1a   : > { %3587 = vmatprep.subr.bf16.mxu1 %v4157_v0  ;;  %3603 = vmatprep.subr.bf16.mxu0 %v4157_v0 }
  0x1c   : > { %3604 = vmatpush3.bf16.msra.mxu0 %v4027_v17 }
  0x1d   : > { %3588 = vmatpush3.bf16.msra.mxu1 %v4256_v3  ;;  %3605 = vmatprep.subr.bf16.mxu0 %v4157_v0 }
  0x1e   : > { %3613 = vmatprep.subr.bf16.mxu1 %v4157_v0 }
  0x20   : > { %3590 = vmatmul.mubr.msk.bf16.vlgmr.msra.gmra.mrb[4].mxu1 %vm463_vm1, %v4014_v8  ;;  %3606 = vmatpush3.bf16.msra.mxu0 %v4029_v19  ;;  %v4055_v8 = vld [vmem:[%s4958_s4 + $0x50] sm:$0xff]   ;;  %v3128_v19 = vld [vmem:[%s4957_s3] ss:$0 sm:$0xff] }
  0x21   : > { %3614 = vmatpush3.bf16.msra.mxu1 %v4015_v10  ;;  %3629 = vmatprep.mubr.msk.bf16.mxu1 %vm4158_vm0, %v4157_v0  ;;  %v4059_v10 = vld [vmem:[%s4958_s4 + $0x60] sm:$0xff]  }
  0x22   : > { %3615 = vmatprep.subr.bf16.mxu1 %v4157_v0  ;;  %3607 = vmatprep.subr.bf16.mxu0 %v4157_v0 }
  0x24   : > { %3608 = vmatpush3.bf16.msra.mxu0 %v4030_v20 }
  0x25   : > { %3616 = vmatpush3.bf16.msra.mxu1 %v4016_v11  ;;  %3633 = vmatprep.subr.bf16.mxu0 %v4157_v0  ;;  %v4061_v11 = vld [vmem:[%s4958_s4 + $0x68] sm:$0xff]  }
  0x26   : > { %3617 = vmatprep.subr.bf16.mxu1 %v4157_v0 }
  0x29   : > { %3618 = vmatpush3.bf16.msra.mxu1 %v4018_v12 }
  0x2a   : > { %3619 = vmatprep.subr.bf16.mxu1 %v4157_v0 }
  0x2d   : > { %3620 = vmatpush3.bf16.msra.mxu1 %v4020_v13 }
  0x2e   : > { %3621 = vmatprep.subr.bf16.mxu1 %v4157_v0 }
  0x31   : > { %3622 = vmatpush3.bf16.msra.mxu1 %v4022_v14 }
  0x32   : > { %3623 = vmatprep.subr.bf16.mxu1 %v4157_v0 }
  0x35   : > { %3624 = vmatpush3.bf16.msra.mxu1 %v4024_v15 }
  0x36   : > { %3625 = vmatprep.subr.bf16.mxu1 %v4157_v0 }
  0x39   : > { %3626 = vmatpush3.bf16.msra.mxu1 %v4026_v16 }
  0x3a   : > { %3627 = vmatprep.subr.bf16.mxu1 %v4157_v0 }
  0x3d   : > { %3628 = vmatpush3.bf16.msra.mxu1 %v4028_v18 }
  0x3e   : > { %3641 = vmatprep.subr.bf16.mxu1 %v4157_v0 }
  0xeb   : > { %v501_v21 = vpop.f32.mrb[0].mxu1 }
  0xec   : > { %v3583_v22 = vpop.f32.mrb[1].mxu1 }
  0xed   : > { %v504_v23 = vpop.f32.mrb[2].mxu1 }
  0xee   : > { %v508_v25 = vpack.c.bf16 %v504_v23, %v501_v21  ;;  %v3584_v26 = vpop.f32.mrb[3].mxu1 }
  0xf0   : > { %3630 = vmatmul.mubr.bf16.vlgmr.msra.gmra.mrb[8].mxu1 %v508_v25 }
  0xf1   : > { %3642 = vmatpush3.bf16.msra.mxu1 %v4033_v24  ;;  %3657 = vmatprep.mubr.msk.bf16.mxu1 %vm4158_vm0, %v4157_v0 }
  0xf2   : > { %3643 = vmatprep.subr.bf16.mxu1 %v4157_v0 }
  0xf3   : > { %v570_v28 = vpop.f32.mrb[4].mxu1 }
  0xf4   : > { %v3591_v29 = vpop.f32.mrb[5].mxu1 }
  0xf5   : > { %v573_v30 = vpop.f32.mrb[6].mxu1  ;;  %3644 = vmatpush3.bf16.msra.mxu1 %v4034_v27 }
  0xf6   : > { %v577_v31 = vpack.c.bf16 %v573_v30, %v570_v28  ;;  %v3592_v32 = vpop.f32.mrb[7].mxu1  ;;  %3645 = vmatprep.subr.bf16.mxu1 %v4157_v0 }
  0xf7   : > { %v1111_v32 = vld [vmem:[%s4959_s5] sm:$0xf] }
  0xf8   : > { %3610 = vmatmul.mubr.bf16.vlgmr.msra.gmra.mrb[0].mxu0 %v577_v31 }
  0xf9   : > { %3634 = vmatpush3.bf16.msra.mxu0 %v4252_v2  ;;  %3637 = vmatprep.mubr.msk.bf16.mxu0 %vm4158_vm0, %v4157_v0 }
  0xfa   : > { %3635 = vmatprep.subr.bf16.mxu0 %v4157_v0  ;;  %3646 = vmatpush3.bf16.msra.mxu1 %v4035_v33  ;;  %v3130_v33 = vld [vmem:[%s4959_s5 + $0x4] sm:$0xf] }
  0xfb   : > { %3647 = vmatprep.subr.bf16.mxu1 %v4157_v0 }
  0xfd   : > { %3636 = vmatpush3.bf16.msra.mxu0 %v4256_v3 }
  0xfe   : > { %3661 = vmatprep.subr.bf16.mxu0 %v4157_v0  ;;  %3648 = vmatpush3.bf16.msra.mxu1 %v4037_v37  ;;  %v4054_v37 = vld [vmem:[%s4958_s4 + $0x18] sm:$0xff]  }
  0xff   : > { %3649 = vmatprep.subr.bf16.mxu1 %v4157_v0 }
 0x100   : > { %3638 = vmatmul.mubr.msk.bf16.vlgmr.msra.gmra.mrb[4].mxu0 %vm463_vm1, %v4031_v34  ;;  %v4049_v34 = vld [vmem:[%s4958_s4] sm:$0xff]  }
 0x101   : > { %3662 = vmatpush3.bf16.msra.mxu0 %v4252_v2  ;;  %3665 = vmatprep.mubr.msk.bf16.mxu0 %vm4158_vm0, %v4157_v0 }
 0x102   : > { %3663 = vmatprep.subr.bf16.mxu0 %v4157_v0  ;;  %3650 = vmatpush3.bf16.msra.mxu1 %v4039_v39  ;;  %v4058_v39 = vld [vmem:[%s4958_s4 + $0x28] sm:$0xff]  }
 0x103   : > { %3651 = vmatprep.subr.bf16.mxu1 %v4157_v0 }
 0x105   : > { %3664 = vmatpush3.bf16.msra.mxu0 %v4256_v3 }
 0x106   : > { %3669 = vmatprep.subr.bf16.mxu0 %v4157_v0  ;;  %3652 = vmatpush3.bf16.msra.mxu1 %v4041_v41  ;;  %v4062_v41 = vld [vmem:[%s4958_s4 + $0x38] sm:$0xff]  }
 0x107   : > { %3653 = vmatprep.subr.bf16.mxu1 %v4157_v0 }
 0x108   : > { %3666 = vmatmul.mubr.msk.bf16.vlgmr.msra.gmra.mrb[8].mxu0 %vm463_vm1, %v4032_v35  ;;  %v4050_v35 = vld [vmem:[%s4958_s4 + $0x8] sm:$0xff]  }
 0x109   : > { %3670 = vmatpush3.bf16.msra.mxu0 %v4036_v36  ;;  %3685 = vmatprep.mubr.msk.bf16.mxu0 %vm4158_vm0, %v4157_v0  ;;  %v4052_v36 = vld [vmem:[%s4958_s4 + $0x10] sm:$0xff]  }
 0x10a   : > { %3671 = vmatprep.subr.bf16.mxu0 %v4157_v0  ;;  %3654 = vmatpush3.bf16.msra.mxu1 %v4043_v43  ;;  %v4064_v43 = vld [vmem:[%s4958_s4 + $0x78] sm:$0xff]  }
 0x10b   : > { %3655 = vmatprep.subr.bf16.mxu1 %v4157_v0 }
 0x10d   : > { %3672 = vmatpush3.bf16.msra.mxu0 %v4038_v38  ;;  %v4056_v38 = vld [vmem:[%s4958_s4 + $0x20] sm:$0xff]  }
 0x10e   : > { %3673 = vmatprep.subr.bf16.mxu0 %v4157_v0  ;;  %3656 = vmatpush3.bf16.msra.mxu1 %v4045_v45  ;;  %v4065_v45 = vld [vmem:[%s4958_s4 + $0x80] sm:$0xff]  }
 0x10f   : > { %3689 = vmatprep.subr.bf16.mxu1 %v4157_v0 }
 0x111   : > { %3674 = vmatpush3.bf16.msra.mxu0 %v4040_v40  ;;  %v4060_v40 = vld [vmem:[%s4958_s4 + $0x30] sm:$0xff]  }
 0x112   : > { %3675 = vmatprep.subr.bf16.mxu0 %v4157_v0 }
 0x115   : > { %3676 = vmatpush3.bf16.msra.mxu0 %v4042_v42  ;;  %v4063_v42 = vld [vmem:[%s4958_s4 + $0x70] sm:$0xff]  }
 0x116   : > { %3677 = vmatprep.subr.bf16.mxu0 %v4157_v0 }
 0x119   : > { %3678 = vmatpush3.bf16.msra.mxu0 %v4044_v44 }
 0x11a   : > { %3679 = vmatprep.subr.bf16.mxu0 %v4157_v0 }
 0x11d   : > { %3680 = vmatpush3.bf16.msra.mxu0 %v4046_v46 }
 0x11e   : > { %3681 = vmatprep.subr.bf16.mxu0 %v4157_v0 }
 0x121   : > { %3682 = vmatpush3.bf16.msra.mxu0 %v4047_v47 }
 0x122   : > { %3683 = vmatprep.subr.bf16.mxu0 %v4157_v0 }
 0x125   : > { %3684 = vmatpush3.bf16.msra.mxu0 %v4048_v48 }
 0x126   : > { %3701 = vmatprep.subr.bf16.mxu0 %v4157_v0 }
 0x1c3   : > { %v766_v49 = vpop.f32.mrb[8].mxu1 }
 0x1c4   : > { %v3631_v50 = vpop.f32.mrb[9].mxu1 }
 0x1c5   : > { %v769_v51 = vpop.f32.mrb[10].mxu1  ;;  %v4066_v50 = vld [vmem:[%s4958_s4 + $0x88] sm:$0xff]  }
 0x1c6   : > { %v3632_v52 = vpop.f32.mrb[11].mxu1 }
 0x1cb   : > { %v677_v53 = vpop.f32.mrb[0].mxu0 }
 0x1cc   : > { %v767_v54 = vadd.f32 %v766_v49, %v677_v53  ;;  %v3611_v55 = vpop.f32.mrb[1].mxu0 }
 0x1cd   : > { %v680_v56 = vpop.f32.mrb[2].mxu0 }
 0x1ce   : > { %v770_v57 = vadd.f32 %v769_v51, %v680_v56  ;;  %v3612_v58 = vpop.f32.mrb[3].mxu0 }
 0x1cf   : > { %v3190_v58 = vld [vmem:[%s4959_s5 + $0xc] sm:$0xf] }
 0x1d3   : > { %v818_v59 = vpop.f32.mrb[4].mxu0 }
 0x1d4   : > { %v3639_v60 = vpop.f32.mrb[5].mxu0 }
 0x1d5   : > { %v821_v61 = vpop.f32.mrb[6].mxu0  ;;  %v4069_v60 = vld [vmem:[%s4958_s4 + $0x98] sm:$0xff]  }
 0x1d6   : > { %v825_v62 = vpack.c.bf16 %v821_v61, %v818_v59  ;;  %v3640_v63 = vpop.f32.mrb[7].mxu0  ;;  %v4068_v59 = vld [vmem:[%s4958_s4 + $0xc0] sm:$0xff]   ;;  %v4070_v61 = vld [vmem:[%s4958_s4 + $0xc8] sm:$0xff]  }
 0x1d7   : > { %v4072_v63 = vld [vmem:[%s4958_s4 + $0xd0] sm:$0xff]  }
 0x1d8   : > { %3658 = vmatmul.mubr.bf16.vlgmr.msra.gmra.mrb[12].mxu1 %v825_v62  ;;  %v4071_v62 = vld [vmem:[%s4958_s4 + $0xa0] sm:$0xff]  }
 0x1d9   : > { %3691 = vmatprep.mubr.msk.bf16.mxu1 %vm4158_vm0, %v4157_v0 }
 0x1db   : > { %v979_v1 = vpop.f32.mrb[8].mxu0 }
 0x1dc   : > { %v3667_v2 = vpop.f32.mrb[9].mxu0 }
 0x1dd   : > { %v982_v3 = vpop.f32.mrb[10].mxu0  ;;  %v4074_v2 = vld [vmem:[%s4958_s4 + $0xd8] sm:$0xff]  }
 0x1de   : > { %v986_v4 = vpack.c.bf16 %v982_v3, %v979_v1  ;;  %v3668_v5 = vpop.f32.mrb[11].mxu0  ;;  %v4073_v1 = vld [vmem:[%s4958_s4 + $0xa8] sm:$0xff]   ;;  %v4075_v3 = vld [vmem:[%s4958_s4 + $0xb0] sm:$0xff]  }
 0x1df   : > { %v4077_v5 = vld [vmem:[%s4958_s4 + $0xb8] sm:$0xff]  }
 0x1e0   : > { %3686 = vmatmul.mubr.bf16.vlgmr.msra.gmra.mrb[12].mxu0 %v986_v4  ;;  %v4076_v4 = vld [vmem:[%s4958_s4 + $0xe0] sm:$0xff]  }
 0x1e1   : > { %3717 = vmatprep.mubr.msk.bf16.mxu0 %vm4158_vm0, %v4157_v0  ;;  %3702 = vmatpush3.bf16.msra.mxu0 %v4051_v6  ;;  %v4078_v6 = vld [vmem:[%s4958_s4 + $0xe8] sm:$0xff]  }
 0x1e2   : > { %3703 = vmatprep.subr.bf16.mxu0 %v4157_v0 }
 0x1e5   : > { %3704 = vmatpush3.bf16.msra.mxu0 %v4053_v7  ;;  %v4079_v7 = vld [vmem:[%s4958_s4 + $0xf0] sm:$0xff]  }
 0x1e6   : > { %3705 = vmatprep.subr.bf16.mxu0 %v4157_v0 }
 0x1e9   : > { %3706 = vmatpush3.bf16.msra.mxu0 %v4055_v8  ;;  %v4080_v8 = vld [vmem:[%s4958_s4 + $0xf8] sm:$0xff]  }
 0x1ea   : > { %3707 = vmatprep.subr.bf16.mxu0 %v4157_v0 }
 0x1ed   : > { %3708 = vmatpush3.bf16.msra.mxu0 %v4057_v9 }
 0x1ee   : > { %3709 = vmatprep.subr.bf16.mxu0 %v4157_v0 }
 0x1f1   : > { %3710 = vmatpush3.bf16.msra.mxu0 %v4059_v10 }
 0x1f2   : > { %3711 = vmatprep.subr.bf16.mxu0 %v4157_v0 }
 0x1f5   : > { %3712 = vmatpush3.bf16.msra.mxu0 %v4061_v11 }
 0x1f6   : > { %3713 = vmatprep.subr.bf16.mxu0 %v4157_v0 }
 0x1f9   : > { %3714 = vmatpush3.bf16.msra.mxu0 %v4063_v42 }
 0x1fa   : > { %3715 = vmatprep.subr.bf16.mxu0 %v4157_v0 }
 0x1fd   : > { %3716 = vmatpush3.bf16.msra.mxu0 %v4064_v43 }
 0x1fe   : > { %3741 = vmatprep.subr.bf16.mxu0 %v4157_v0 }
 0x2ab   : > { %v925_v12 = vpop.f32.mrb[12].mxu1 }
 0x2ac   : > { %v932_v13 = vadd.f32 %v925_v12, %v767_v54  ;;  %v3659_v14 = vpop.f32.mrb[13].mxu1  ;;  %v4067_v54 = vld [vmem:[%s4958_s4 + $0x90] sm:$0xff]  }
 0x2ad   : > { %v928_v15 = vpop.f32.mrb[14].mxu1 }
 0x2ae   : > { %v933_v16 = vadd.f32 %v928_v15, %v770_v57  ;;  %v3660_v17 = vpop.f32.mrb[15].mxu1  ;;  %v3164_v57 = vld [vmem:[%s4959_s5 + $0x8] sm:$0xf] }
 0x2b3   : > { %v1086_v18 = vpop.f32.mrb[12].mxu0 }
 0x2b4   : > { %v1093_v20 = vadd.f32 %v1086_v18, %v932_v13  ;;  %v3687_v21 = vpop.f32.mrb[13].mxu0 }
 0x2b5   : > { %v1089_v22 = vpop.f32.mrb[14].mxu0 }
 0x2b6   : > { %v1102_v23 = vadd.f32 %v3128_v19, %v1093_v20  ;;  %v1094_v24 = vadd.f32 %v1089_v22, %v933_v16  ;;  %v3688_v25 = vpop.f32.mrb[15].mxu0 }
 0x2b8   : > { %v1106_v26 = vmul.f32 0.2, %v1102_v23  ;;  %v1103_v27 = vadd.f32 %v3128_v19, %v1094_v24  ;;  %vm1104_vm2 = vcmp.gt.f32.partialorder %v1102_v23, 0.0 }
 0x2ba   : > { %vm1105_vm3 = vcmp.gt.f32.partialorder %v1103_v27, 0.0  ;;  %v1107_v28 = vmul.f32 0.2, %v1103_v27  ;;  %v1108_v29 = vsel %vm1104_vm2, %v1102_v23, %v1106_v26 }
 0x2bc   : > { %v1109_v30 = vsel %vm1105_vm3, %v1103_v27, %v1107_v28  ;;  %v4083_v28 = vld [vmem:[%s4961_s7 + $0x40] sm:$0xff]  }
 0x2bd   : > { %v4456_v31 = vpack.c.bf16 %v1109_v30, %v1108_v29  ;;  %v4085_v29 = vld [vmem:[%s4961_s7 + $0x48] sm:$0xff]   ;;  %v4087_v30 = vld [vmem:[%s4961_s7 + $0x50] sm:$0xff]  }
 0x2bf   : > { %3690 = vmatpush3.bf16.msra.mxu1 %v4456_v31 }
 0x2c0   : > { %3695 = vmatprep.subr.bf16.mxu1 %v4157_v0 }
 0x2c2   : > { %3692 = vmatmul.mubr.msk.bf16.vlgmr.msra.gmra.mrb[16].mxu1 %vm1112_vm4, %v1111_v32  ;;  %v4091_v32 = vld [vmem:[%s4961_s7 + $0x60] sm:$0xff]  }
 0x2c3   : > { %3696 = vmatpush3.bf16.msra.mxu1 %v4456_v31  ;;  %3697 = vmatprep.mubr.msk.bf16.mxu1 %vm4158_vm0, %v4157_v0 }
 0x2c4   : > { %3721 = vmatprep.subr.bf16.mxu1 %v4157_v0 }
 0x2ca   : > { %3698 = vmatmul.mubr.msk.bf16.vlgmr.msra.gmra.mrb[20].mxu1 %vm1112_vm4, %v3130_v33  ;;  %v4093_v33 = vld [vmem:[%s4961_s7 + $0x68] sm:$0xff]  }
 0x2cb   : > { %3722 = vmatpush3.bf16.msra.mxu1 %v4049_v34  ;;  %3737 = vmatprep.mubr.msk.bf16.mxu1 %vm4158_vm0, %v4157_v0 }
 0x2cc   : > { %3723 = vmatprep.subr.bf16.mxu1 %v4157_v0 }
 0x2cf   : > { %3724 = vmatpush3.bf16.msra.mxu1 %v4050_v35 }
 0x2d0   : > { %3725 = vmatprep.subr.bf16.mxu1 %v4157_v0 }
 0x2d3   : > { %3726 = vmatpush3.bf16.msra.mxu1 %v4052_v36 }
 0x2d4   : > { %3727 = vmatprep.subr.bf16.mxu1 %v4157_v0 }
 0x2d7   : > { %3728 = vmatpush3.bf16.msra.mxu1 %v4054_v37 }
 0x2d8   : > { %3729 = vmatprep.subr.bf16.mxu1 %v4157_v0 }
 0x2db   : > { %3730 = vmatpush3.bf16.msra.mxu1 %v4056_v38 }
 0x2dc   : > { %3731 = vmatprep.subr.bf16.mxu1 %v4157_v0 }
 0x2df   : > { %3732 = vmatpush3.bf16.msra.mxu1 %v4058_v39 }
 0x2e0   : > { %3733 = vmatprep.subr.bf16.mxu1 %v4157_v0 }
 0x2e3   : > { %3734 = vmatpush3.bf16.msra.mxu1 %v4060_v40  ;;  %v3216_v40 = vld [vmem:[%s4960_s6] ss:$0 sm:$0xff] }
 0x2e4   : > { %3735 = vmatprep.subr.bf16.mxu1 %v4157_v0 }
 0x2e7   : > { %3736 = vmatpush3.bf16.msra.mxu1 %v4062_v41 }
 0x2e8   : > { %3747 = vmatprep.subr.bf16.mxu1 %v4157_v0 }
 0x395   : > { %v1150_v44 = vpop.f32.mrb[16].mxu1 }
 0x396   : > { %v1156_v46 = vpack.c.bf16 %v1150_v44, %v1150_v44  ;;  %v3693_v47 = vpop.f32.mrb[17].mxu1 }
 0x397   : > { %v1153_v48 = vpop.f32.mrb[18].mxu1 }
 0x398   : > { %v3694_v49 = vpop.f32.mrb[19].mxu1  ;;  %3738 = vmatmul.mubr.bf16.vlgmr.msra.gmra.mrb[24].mxu1 %v1156_v46 }
 0x399   : > { %3748 = vmatpush3.bf16.msra.mxu1 %v4065_v45  ;;  %3763 = vmatprep.mubr.msk.bf16.mxu1 %vm4158_vm0, %v4157_v0 }
 0x39a   : > { %3749 = vmatprep.subr.bf16.mxu1 %v4157_v0 }
 0x39d   : > { %v1212_v51 = vpop.f32.mrb[20].mxu1  ;;  %3750 = vmatpush3.bf16.msra.mxu1 %v4066_v50  ;;  %v1728_v50 = vld [vmem:[%s4962_s8] sm:$0xf] }
 0x39e   : > { %v1218_v52 = vpack.c.bf16 %v1212_v51, %v1212_v51  ;;  %v3699_v53 = vpop.f32.mrb[21].mxu1  ;;  %3751 = vmatprep.subr.bf16.mxu1 %v4157_v0  ;;  %v3218_v51 = vld [vmem:[%s4962_s8 + $0x4] sm:$0xf] }
 0x39f   : > { %v1215_v55 = vpop.f32.mrb[22].mxu1  ;;  %v4082_v53 = vld [vmem:[%s4961_s7 + $0x8] sm:$0xff]  }
 0x3a0   : > { %v3700_v56 = vpop.f32.mrb[23].mxu1  ;;  %3718 = vmatmul.mubr.bf16.vlgmr.msra.gmra.mrb[16].mxu0 %v1218_v52  ;;  %v4081_v52 = vld [vmem:[%s4961_s7] sm:$0xff]   ;;  %v4086_v55 = vld [vmem:[%s4961_s7 + $0x18] sm:$0xff]  }
 0x3a1   : > { %3742 = vmatpush3.bf16.msra.mxu0 %v4456_v31  ;;  %3743 = vmatprep.mubr.msk.bf16.mxu0 %vm4158_vm0, %v4157_v0  ;;  %v4088_v56 = vld [vmem:[%s4961_s7 + $0x20] sm:$0xff]  }
 0x3a2   : > { %3767 = vmatprep.subr.bf16.mxu0 %v4157_v0  ;;  %3752 = vmatpush3.bf16.msra.mxu1 %v4067_v54  ;;  %v4084_v54 = vld [vmem:[%s4961_s7 + $0x10] sm:$0xff]  }
 0x3a3   : > { %3753 = vmatprep.subr.bf16.mxu1 %v4157_v0 }
 0x3a6   : > { %3754 = vmatpush3.bf16.msra.mxu1 %v4069_v60  ;;  %v4095_v60 = vld [vmem:[%s4961_s7 + $0x70] sm:$0xff]  }
 0x3a7   : > { %3755 = vmatprep.subr.bf16.mxu1 %v4157_v0 }
 0x3a8   : > { %3744 = vmatmul.mubr.msk.bf16.vlgmr.msra.gmra.mrb[20].mxu0 %vm1112_vm4, %v3164_v57  ;;  %v4090_v57 = vld [vmem:[%s4961_s7 + $0x28] sm:$0xff]  }
 0x3a9   : > { %3768 = vmatpush3.bf16.msra.mxu0 %v4456_v31  ;;  %3769 = vmatprep.mubr.msk.bf16.mxu0 %vm4158_vm0, %v4157_v0  ;;  %v4089_v31 = vld [vmem:[%s4961_s7 + $0x58] sm:$0xff]  }
 0x3aa   : > { %3773 = vmatprep.subr.bf16.mxu0 %v4157_v0  ;;  %3756 = vmatpush3.bf16.msra.mxu1 %v4071_v62 }
 0x3ab   : > { %3757 = vmatprep.subr.bf16.mxu1 %v4157_v0 }
 0x3ae   : > { %3758 = vmatpush3.bf16.msra.mxu1 %v4073_v1 }
 0x3af   : > { %3759 = vmatprep.subr.bf16.mxu1 %v4157_v0 }
 0x3b0   : > { %3770 = vmatmul.mubr.msk.bf16.vlgmr.msra.gmra.mrb[24].mxu0 %vm1112_vm4, %v3190_v58  ;;  %v4092_v58 = vld [vmem:[%s4961_s7 + $0x30] sm:$0xff]  }
 0x3b1   : > { %3774 = vmatpush3.bf16.msra.mxu0 %v4068_v59  ;;  %3789 = vmatprep.mubr.msk.bf16.mxu0 %vm4158_vm0, %v4157_v0  ;;  %v4094_v59 = vld [vmem:[%s4961_s7 + $0x38] sm:$0xff]  }
 0x3b2   : > { %3775 = vmatprep.subr.bf16.mxu0 %v4157_v0  ;;  %3760 = vmatpush3.bf16.msra.mxu1 %v4075_v3 }
 0x3b3   : > { %3761 = vmatprep.subr.bf16.mxu1 %v4157_v0 }
 0x3b5   : > { %3776 = vmatpush3.bf16.msra.mxu0 %v4070_v61  ;;  %v4096_v61 = vld [vmem:[%s4961_s7 + $0x78] sm:$0xff]  }
 0x3b6   : > { %3777 = vmatprep.subr.bf16.mxu0 %v4157_v0  ;;  %3762 = vmatpush3.bf16.msra.mxu1 %v4077_v5  ;;  %v4098_v5 = vld [vmem:[%s4961_s7 + $0x88] sm:$0xff]  }
 0x3b7   : > { %3793 = vmatprep.subr.bf16.mxu1 %v4157_v0 }
 0x3b9   : > { %3778 = vmatpush3.bf16.msra.mxu0 %v4072_v63  ;;  %v4097_v63 = vld [vmem:[%s4961_s7 + $0x80] sm:$0xff]  }
 0x3ba   : > { %3779 = vmatprep.subr.bf16.mxu0 %v4157_v0 }
 0x3bd   : > { %3780 = vmatpush3.bf16.msra.mxu0 %v4074_v2 }
 0x3be   : > { %3781 = vmatprep.subr.bf16.mxu0 %v4157_v0 }
 0x3c1   : > { %3782 = vmatpush3.bf16.msra.mxu0 %v4076_v4 }
 0x3c2   : > { %3783 = vmatprep.subr.bf16.mxu0 %v4157_v0 }
 0x3c5   : > { %3784 = vmatpush3.bf16.msra.mxu0 %v4078_v6 }
 0x3c6   : > { %3785 = vmatprep.subr.bf16.mxu0 %v4157_v0 }
 0x3c9   : > { %3786 = vmatpush3.bf16.msra.mxu0 %v4079_v7 }
 0x3ca   : > { %3787 = vmatprep.subr.bf16.mxu0 %v4157_v0 }
 0x3cd   : > { %3788 = vmatpush3.bf16.msra.mxu0 %v4080_v8 }
 0x3ce   : > { %3805 = vmatprep.subr.bf16.mxu0 %v4157_v0 }
 0x46b   : > { %v1406_v9 = vpop.f32.mrb[24].mxu1 }
 0x46c   : > { %v3739_v10 = vpop.f32.mrb[25].mxu1 }
 0x46d   : > { %v1409_v11 = vpop.f32.mrb[26].mxu1 }
 0x46e   : > { %v3740_v12 = vpop.f32.mrb[27].mxu1 }
 0x46f   : > { %v3252_v12 = vld [vmem:[%s4962_s8 + $0x8] sm:$0xf] }
 0x473   : > { %v1318_v13 = vpop.f32.mrb[16].mxu0 }
 0x474   : > { %v1407_v14 = vadd.f32 %v1406_v9, %v1318_v13  ;;  %v3719_v15 = vpop.f32.mrb[17].mxu0  ;;  %v4099_v9 = vld [vmem:[%s4961_s7 + $0x90] sm:$0xff]   ;;  %v3278_v13 = vld [vmem:[%s4962_s8 + $0xc] sm:$0xf] }
 0x475   : > { %v1321_v16 = vpop.f32.mrb[18].mxu0  ;;  %v4101_v15 = vld [vmem:[%s4961_s7 + $0x98] sm:$0xff]  }
 0x476   : > { %v3720_v17 = vpop.f32.mrb[19].mxu0  ;;  %v4102_v16 = vld [vmem:[%s4961_s7 + $0xc8] sm:$0xff]  }
 0x477   : > { %v4103_v17 = vld [vmem:[%s4961_s7 + $0xa0] sm:$0xff]  }
 0x47b   : > { %v1451_v18 = vpop.f32.mrb[20].mxu0 }
 0x47c   : > { %v1457_v19 = vpack.c.bf16 %v1451_v18, %v1451_v18  ;;  %v3745_v20 = vpop.f32.mrb[21].mxu0  ;;  %v4104_v18 = vld [vmem:[%s4961_s7 + $0xd0] sm:$0xff]  }
 0x47d   : > { %v1454_v21 = vpop.f32.mrb[22].mxu0  ;;  %v4106_v20 = vld [vmem:[%s4961_s7 + $0xd8] sm:$0xff]  }
 0x47e   : > { %v3746_v22 = vpop.f32.mrb[23].mxu0  ;;  %3764 = vmatmul.mubr.bf16.vlgmr.msra.gmra.mrb[28].mxu1 %v1457_v19  ;;  %v4105_v19 = vld [vmem:[%s4961_s7 + $0xa8] sm:$0xff]   ;;  %v4107_v21 = vld [vmem:[%s4961_s7 + $0xb0] sm:$0xff]  }
 0x47f   : > { %3795 = vmatprep.mubr.msk.bf16.mxu1 %vm4158_vm0, %v4157_v0  ;;  %v4108_v22 = vld [vmem:[%s4961_s7 + $0xe0] sm:$0xff]  }
 0x483   : > { %v1603_v23 = vpop.f32.mrb[24].mxu0 }
 0x484   : > { %v1609_v24 = vpack.c.bf16 %v1603_v23, %v1603_v23  ;;  %v3771_v25 = vpop.f32.mrb[25].mxu0  ;;  %v4109_v23 = vld [vmem:[%s4961_s7 + $0xb8] sm:$0xff]  }
 0x485   : > { %v1606_v26 = vpop.f32.mrb[26].mxu0  ;;  %v4111_v25 = vld [vmem:[%s4961_s7 + $0xf0] sm:$0xff]  }
 0x486   : > { %v3772_v27 = vpop.f32.mrb[27].mxu0  ;;  %3790 = vmatmul.mubr.bf16.vlgmr.msra.gmra.mrb[28].mxu0 %v1609_v24  ;;  %v4110_v24 = vld [vmem:[%s4961_s7 + $0xe8] sm:$0xff]   ;;  %v4112_v26 = vld [vmem:[%s4961_s7 + $0xf8] sm:$0xff]  }
 0x487   : > { %3821 = vmatprep.mubr.msk.bf16.mxu0 %vm4158_vm0, %v4157_v0  ;;  %3806 = vmatpush3.bf16.msra.mxu0 %v4083_v28 }
 0x488   : > { %3807 = vmatprep.subr.bf16.mxu0 %v4157_v0 }
 0x48b   : > { %3808 = vmatpush3.bf16.msra.mxu0 %v4085_v29 }
 0x48c   : > { %3809 = vmatprep.subr.bf16.mxu0 %v4157_v0 }
 0x48f   : > { %3810 = vmatpush3.bf16.msra.mxu0 %v4087_v30 }
 0x490   : > { %3811 = vmatprep.subr.bf16.mxu0 %v4157_v0 }
 0x493   : > { %3812 = vmatpush3.bf16.msra.mxu0 %v4089_v31 }
 0x494   : > { %3813 = vmatprep.subr.bf16.mxu0 %v4157_v0 }
 0x497   : > { %3814 = vmatpush3.bf16.msra.mxu0 %v4091_v32 }
 0x498   : > { %3815 = vmatprep.subr.bf16.mxu0 %v4157_v0 }
 0x49b   : > { %3816 = vmatpush3.bf16.msra.mxu0 %v4093_v33 }
 0x49c   : > { %3817 = vmatprep.subr.bf16.mxu0 %v4157_v0 }
 0x49f   : > { %3818 = vmatpush3.bf16.msra.mxu0 %v4095_v60 }
 0x4a0   : > { %3819 = vmatprep.subr.bf16.mxu0 %v4157_v0 }
 0x4a3   : > { %3820 = vmatpush3.bf16.msra.mxu0 %v4096_v61 }
 0x4a4   : > { %3845 = vmatprep.subr.bf16.mxu0 %v4157_v0 }
 0x551   : > { %v1557_v34 = vpop.f32.mrb[28].mxu1 }
 0x552   : > { %v1563_v35 = vadd.f32 %v1557_v34, %v1407_v14  ;;  %v3765_v36 = vpop.f32.mrb[29].mxu1  ;;  %v4100_v14 = vld [vmem:[%s4961_s7 + $0xc0] sm:$0xff]  }
 0x553   : > { %v1560_v37 = vpop.f32.mrb[30].mxu1 }
 0x554   : > { %v3766_v38 = vpop.f32.mrb[31].mxu1 }
 0x559   : > { %v1709_v39 = vpop.f32.mrb[28].mxu0 }
 0x55a   : > { %v1715_v41 = vadd.f32 %v1709_v39, %v1563_v35  ;;  %v3791_v42 = vpop.f32.mrb[29].mxu0 }
 0x55b   : > { %v1712_v43 = vpop.f32.mrb[30].mxu0 }
 0x55c   : > { %v1723_v44 = vadd.f32 %v3216_v40, %v1715_v41  ;;  %v3792_v45 = vpop.f32.mrb[31].mxu0 }
 0x55e   : > { %vm1724_vm5 = vcmp.gt.f32.partialorder %v1723_v44, 0.0  ;;  %v1725_v46 = vmul.f32 0.2, %v1723_v44 }
 0x560   : > { %v1726_v47 = vsel %vm1724_vm5, %v1723_v44, %v1725_v46  ;;  %v4115_v46 = vld [vmem:[%s4964_s10 + $0x40] sm:$0xff]  }
 0x561   : > { %v1727_v48 = vpack.c.bf16 %v1726_v47, %v1726_v47  ;;  %v4117_v47 = vld [vmem:[%s4964_s10 + $0x48] sm:$0xff]  }
 0x563   : > { %v4630_v49 = vsel %vm1733_vm6, %v1727_v48, 0  ;;  %v4119_v48 = vld [vmem:[%s4964_s10 + $0x50] sm:$0xff]  }
 0x564   : > { %3794 = vmatpush3.bf16.msra.mxu1 %v4630_v49 }
 0x565   : > { %3799 = vmatprep.subr.bf16.mxu1 %v4157_v0 }
 0x567   : > { %3796 = vmatmul.mubr.msk.bf16.vlgmr.msra.gmra.mrb[32].mxu1 %vm1729_vm7, %v1728_v50  ;;  %v4123_v50 = vld [vmem:[%s4964_s10 + $0x60] sm:$0xff]  }
 0x568   : > { %3800 = vmatpush3.bf16.msra.mxu1 %v4630_v49  ;;  %3801 = vmatprep.mubr.msk.bf16.mxu1 %vm4158_vm0, %v4157_v0 }
 0x569   : > { %3825 = vmatprep.subr.bf16.mxu1 %v4157_v0 }
 0x56f   : > { %3802 = vmatmul.mubr.msk.bf16.vlgmr.msra.gmra.mrb[36].mxu1 %vm1729_vm7, %v3218_v51  ;;  %v4125_v51 = vld [vmem:[%s4964_s10 + $0x68] sm:$0xff]  }
 0x570   : > { %3826 = vmatpush3.bf16.msra.mxu1 %v4081_v52  ;;  %3841 = vmatprep.mubr.msk.bf16.mxu1 %vm4158_vm0, %v4157_v0 }
 0x571   : > { %3827 = vmatprep.subr.bf16.mxu1 %v4157_v0 }
 0x574   : > { %3828 = vmatpush3.bf16.msra.mxu1 %v4082_v53 }
 0x575   : > { %3829 = vmatprep.subr.bf16.mxu1 %v4157_v0 }
 0x578   : > { %3830 = vmatpush3.bf16.msra.mxu1 %v4084_v54 }
 0x579   : > { %3831 = vmatprep.subr.bf16.mxu1 %v4157_v0 }
 0x57c   : > { %3832 = vmatpush3.bf16.msra.mxu1 %v4086_v55 }
 0x57d   : > { %3833 = vmatprep.subr.bf16.mxu1 %v4157_v0 }
 0x580   : > { %3834 = vmatpush3.bf16.msra.mxu1 %v4088_v56 }
 0x581   : > { %3835 = vmatprep.subr.bf16.mxu1 %v4157_v0 }
 0x584   : > { %3836 = vmatpush3.bf16.msra.mxu1 %v4090_v57 }
 0x585   : > { %3837 = vmatprep.subr.bf16.mxu1 %v4157_v0 }
 0x588   : > { %3838 = vmatpush3.bf16.msra.mxu1 %v4092_v58  ;;  %v3304_v58 = vld [vmem:[%s4963_s9] ss:$0 sm:$0xff] }
 0x589   : > { %3839 = vmatprep.subr.bf16.mxu1 %v4157_v0 }
 0x58c   : > { %3840 = vmatpush3.bf16.msra.mxu1 %v4094_v59 }
 0x58d   : > { %3851 = vmatprep.subr.bf16.mxu1 %v4157_v0 }
 0x63a   : > { %v1771_v62 = vpop.f32.mrb[32].mxu1 }
 0x63b   : > { %v1777_v1 = vpack.c.bf16 %v1771_v62, %v1771_v62  ;;  %v3797_v2 = vpop.f32.mrb[33].mxu1 }
 0x63c   : > { %v1774_v3 = vpop.f32.mrb[34].mxu1 }
 0x63d   : > { %v3798_v4 = vpop.f32.mrb[35].mxu1  ;;  %3842 = vmatmul.mubr.bf16.vlgmr.msra.gmra.mrb[40].mxu1 %v1777_v1 }
 0x63e   : > { %3852 = vmatpush3.bf16.msra.mxu1 %v4097_v63  ;;  %3867 = vmatprep.mubr.msk.bf16.mxu1 %vm4158_vm0, %v4157_v0 }
 0x63f   : > { %3853 = vmatprep.subr.bf16.mxu1 %v4157_v0 }
 0x642   : > { %v1833_v6 = vpop.f32.mrb[36].mxu1  ;;  %3854 = vmatpush3.bf16.msra.mxu1 %v4098_v5  ;;  %v2349_v5 = vld [vmem:[%s4965_s11] sm:$0xf] }
 0x643   : > { %v1839_v7 = vpack.c.bf16 %v1833_v6, %v1833_v6  ;;  %v3803_v8 = vpop.f32.mrb[37].mxu1  ;;  %3855 = vmatprep.subr.bf16.mxu1 %v4157_v0  ;;  %v3306_v6 = vld [vmem:[%s4965_s11 + $0x4] sm:$0xf] }
 0x644   : > { %v1836_v10 = vpop.f32.mrb[38].mxu1  ;;  %v4114_v8 = vld [vmem:[%s4964_s10 + $0x8] sm:$0xff]  }
 0x645   : > { %v3804_v11 = vpop.f32.mrb[39].mxu1  ;;  %3822 = vmatmul.mubr.bf16.vlgmr.msra.gmra.mrb[32].mxu0 %v1839_v7  ;;  %v4113_v7 = vld [vmem:[%s4964_s10] sm:$0xff]   ;;  %v4118_v10 = vld [vmem:[%s4964_s10 + $0x18] sm:$0xff]  }
 0x646   : > { %3846 = vmatpush3.bf16.msra.mxu0 %v4630_v49  ;;  %3847 = vmatprep.mubr.msk.bf16.mxu0 %vm4158_vm0, %v4157_v0  ;;  %v4120_v11 = vld [vmem:[%s4964_s10 + $0x20] sm:$0xff]  }
 0x647   : > { %3871 = vmatprep.subr.bf16.mxu0 %v4157_v0  ;;  %3856 = vmatpush3.bf16.msra.mxu1 %v4099_v9  ;;  %v4116_v9 = vld [vmem:[%s4964_s10 + $0x10] sm:$0xff]  }
 0x648   : > { %3857 = vmatprep.subr.bf16.mxu1 %v4157_v0 }
 0x64b   : > { %3858 = vmatpush3.bf16.msra.mxu1 %v4101_v15  ;;  %v4127_v15 = vld [vmem:[%s4964_s10 + $0x70] sm:$0xff]  }
 0x64c   : > { %3859 = vmatprep.subr.bf16.mxu1 %v4157_v0 }
 0x64d   : > { %3848 = vmatmul.mubr.msk.bf16.vlgmr.msra.gmra.mrb[36].mxu0 %vm1729_vm7, %v3252_v12  ;;  %v4122_v12 = vld [vmem:[%s4964_s10 + $0x28] sm:$0xff]  }
 0x64e   : > { %3872 = vmatpush3.bf16.msra.mxu0 %v4630_v49  ;;  %3873 = vmatprep.mubr.msk.bf16.mxu0 %vm4158_vm0, %v4157_v0  ;;  %v4121_v49 = vld [vmem:[%s4964_s10 + $0x58] sm:$0xff]  }
 0x64f   : > { %3877 = vmatprep.subr.bf16.mxu0 %v4157_v0  ;;  %3860 = vmatpush3.bf16.msra.mxu1 %v4103_v17 }
 0x650   : > { %3861 = vmatprep.subr.bf16.mxu1 %v4157_v0 }
 0x653   : > { %3862 = vmatpush3.bf16.msra.mxu1 %v4105_v19 }
 0x654   : > { %3863 = vmatprep.subr.bf16.mxu1 %v4157_v0 }
 0x655   : > { %3874 = vmatmul.mubr.msk.bf16.vlgmr.msra.gmra.mrb[40].mxu0 %vm1729_vm7, %v3278_v13  ;;  %v4124_v13 = vld [vmem:[%s4964_s10 + $0x30] sm:$0xff]  }
 0x656   : > { %3878 = vmatpush3.bf16.msra.mxu0 %v4100_v14  ;;  %3893 = vmatprep.mubr.msk.bf16.mxu0 %vm4158_vm0, %v4157_v0  ;;  %v4126_v14 = vld [vmem:[%s4964_s10 + $0x38] sm:$0xff]  }
 0x657   : > { %3879 = vmatprep.subr.bf16.mxu0 %v4157_v0  ;;  %3864 = vmatpush3.bf16.msra.mxu1 %v4107_v21 }
 0x658   : > { %3865 = vmatprep.subr.bf16.mxu1 %v4157_v0 }
 0x65a   : > { %3880 = vmatpush3.bf16.msra.mxu0 %v4102_v16  ;;  %v4128_v16 = vld [vmem:[%s4964_s10 + $0x78] sm:$0xff]  }
 0x65b   : > { %3881 = vmatprep.subr.bf16.mxu0 %v4157_v0  ;;  %3866 = vmatpush3.bf16.msra.mxu1 %v4109_v23  ;;  %v4130_v23 = vld [vmem:[%s4964_s10 + $0x88] sm:$0xff]  }
 0x65c   : > { %3897 = vmatprep.subr.bf16.mxu1 %v4157_v0 }
 0x65e   : > { %3882 = vmatpush3.bf16.msra.mxu0 %v4104_v18  ;;  %v4129_v18 = vld [vmem:[%s4964_s10 + $0x80] sm:$0xff]  }
 0x65f   : > { %3883 = vmatprep.subr.bf16.mxu0 %v4157_v0 }
 0x662   : > { %3884 = vmatpush3.bf16.msra.mxu0 %v4106_v20 }
 0x663   : > { %3885 = vmatprep.subr.bf16.mxu0 %v4157_v0 }
 0x666   : > { %3886 = vmatpush3.bf16.msra.mxu0 %v4108_v22 }
 0x667   : > { %3887 = vmatprep.subr.bf16.mxu0 %v4157_v0 }
 0x66a   : > { %3888 = vmatpush3.bf16.msra.mxu0 %v4110_v24 }
 0x66b   : > { %3889 = vmatprep.subr.bf16.mxu0 %v4157_v0 }
 0x66e   : > { %3890 = vmatpush3.bf16.msra.mxu0 %v4111_v25 }
 0x66f   : > { %3891 = vmatprep.subr.bf16.mxu0 %v4157_v0 }
 0x672   : > { %3892 = vmatpush3.bf16.msra.mxu0 %v4112_v26 }
 0x673   : > { %3909 = vmatprep.subr.bf16.mxu0 %v4157_v0 }
 0x710   : > { %v2027_v27 = vpop.f32.mrb[40].mxu1 }
 0x711   : > { %v3843_v28 = vpop.f32.mrb[41].mxu1 }
 0x712   : > { %v2030_v29 = vpop.f32.mrb[42].mxu1 }
 0x713   : > { %v3844_v30 = vpop.f32.mrb[43].mxu1 }
 0x714   : > { %v4133_v30 = vld [vmem:[%s4964_s10 + $0x98] sm:$0xff]  }
 0x718   : > { %v1939_v31 = vpop.f32.mrb[32].mxu0 }
 0x719   : > { %v2028_v32 = vadd.f32 %v2027_v27, %v1939_v31  ;;  %v3823_v33 = vpop.f32.mrb[33].mxu0  ;;  %v4131_v27 = vld [vmem:[%s4964_s10 + $0x90] sm:$0xff]   ;;  %v3340_v31 = vld [vmem:[%s4965_s11 + $0x8] sm:$0xf] }
 0x71a   : > { %v1942_v34 = vpop.f32.mrb[34].mxu0  ;;  %v4132_v33 = vld [vmem:[%s4964_s10 + $0xc0] sm:$0xff]  }
 0x71b   : > { %v3824_v35 = vpop.f32.mrb[35].mxu0  ;;  %v4134_v34 = vld [vmem:[%s4964_s10 + $0xc8] sm:$0xff]  }
 0x71c   : > { %v4135_v35 = vld [vmem:[%s4964_s10 + $0xa0] sm:$0xff]  }
 0x720   : > { %v2072_v36 = vpop.f32.mrb[36].mxu0 }
 0x721   : > { %v2078_v37 = vpack.c.bf16 %v2072_v36, %v2072_v36  ;;  %v3849_v38 = vpop.f32.mrb[37].mxu0  ;;  %v4136_v36 = vld [vmem:[%s4964_s10 + $0xd0] sm:$0xff]  }
 0x722   : > { %v2075_v39 = vpop.f32.mrb[38].mxu0  ;;  %v4138_v38 = vld [vmem:[%s4964_s10 + $0xd8] sm:$0xff]  }
 0x723   : > { %v3850_v40 = vpop.f32.mrb[39].mxu0  ;;  %3868 = vmatmul.mubr.bf16.vlgmr.msra.gmra.mrb[44].mxu1 %v2078_v37  ;;  %v4137_v37 = vld [vmem:[%s4964_s10 + $0xa8] sm:$0xff]   ;;  %v4139_v39 = vld [vmem:[%s4964_s10 + $0xb0] sm:$0xff]  }
 0x724   : > { %3899 = vmatprep.mubr.msk.bf16.mxu1 %vm4158_vm0, %v4157_v0  ;;  %v4140_v40 = vld [vmem:[%s4964_s10 + $0xe0] sm:$0xff]  }
 0x728   : > { %v2224_v41 = vpop.f32.mrb[40].mxu0 }
 0x729   : > { %v2230_v42 = vpack.c.bf16 %v2224_v41, %v2224_v41  ;;  %v3875_v43 = vpop.f32.mrb[41].mxu0  ;;  %v4141_v41 = vld [vmem:[%s4964_s10 + $0xb8] sm:$0xff]  }
 0x72a   : > { %v2227_v44 = vpop.f32.mrb[42].mxu0  ;;  %v4143_v43 = vld [vmem:[%s4964_s10 + $0xf0] sm:$0xff]  }
 0x72b   : > { %v3876_v45 = vpop.f32.mrb[43].mxu0  ;;  %3894 = vmatmul.mubr.bf16.vlgmr.msra.gmra.mrb[44].mxu0 %v2230_v42  ;;  %v4142_v42 = vld [vmem:[%s4964_s10 + $0xe8] sm:$0xff]   ;;  %v4144_v44 = vld [vmem:[%s4964_s10 + $0xf8] sm:$0xff]  }
 0x72c   : > { %3925 = vmatprep.mubr.msk.bf16.mxu0 %vm4158_vm0, %v4157_v0  ;;  %3910 = vmatpush3.bf16.msra.mxu0 %v4115_v46 }
 0x72d   : > { %3911 = vmatprep.subr.bf16.mxu0 %v4157_v0 }
 0x730   : > { %3912 = vmatpush3.bf16.msra.mxu0 %v4117_v47 }
 0x731   : > { %3913 = vmatprep.subr.bf16.mxu0 %v4157_v0 }
 0x734   : > { %3914 = vmatpush3.bf16.msra.mxu0 %v4119_v48 }
 0x735   : > { %3915 = vmatprep.subr.bf16.mxu0 %v4157_v0 }
 0x738   : > { %3916 = vmatpush3.bf16.msra.mxu0 %v4121_v49 }
 0x739   : > { %3917 = vmatprep.subr.bf16.mxu0 %v4157_v0 }
 0x73c   : > { %3918 = vmatpush3.bf16.msra.mxu0 %v4123_v50 }
 0x73d   : > { %3919 = vmatprep.subr.bf16.mxu0 %v4157_v0 }
 0x740   : > { %3920 = vmatpush3.bf16.msra.mxu0 %v4125_v51 }
 0x741   : > { %3921 = vmatprep.subr.bf16.mxu0 %v4157_v0 }
 0x744   : > { %3922 = vmatpush3.bf16.msra.mxu0 %v4127_v15 }
 0x745   : > { %3923 = vmatprep.subr.bf16.mxu0 %v4157_v0 }
 0x748   : > { %3924 = vmatpush3.bf16.msra.mxu0 %v4128_v16 }
 0x749   : > { %3949 = vmatprep.subr.bf16.mxu0 %v4157_v0 }
 0x7f6   : > { %v2178_v52 = vpop.f32.mrb[44].mxu1 }
 0x7f7   : > { %v2184_v53 = vadd.f32 %v2178_v52, %v2028_v32  ;;  %v3869_v54 = vpop.f32.mrb[45].mxu1  ;;  %v3366_v32 = vld [vmem:[%s4965_s11 + $0xc] sm:$0xf] }
 0x7f8   : > { %v2181_v55 = vpop.f32.mrb[46].mxu1 }
 0x7f9   : > { %v3870_v56 = vpop.f32.mrb[47].mxu1 }
 0x7fe   : > { %v2330_v57 = vpop.f32.mrb[44].mxu0 }
 0x7ff   : > { %v2336_v59 = vadd.f32 %v2330_v57, %v2184_v53  ;;  %v3895_v60 = vpop.f32.mrb[45].mxu0 }
 0x800   : > { %v2333_v61 = vpop.f32.mrb[46].mxu0 }
 0x801   : > { %v2344_v62 = vadd.f32 %v3304_v58, %v2336_v59  ;;  %v3896_v63 = vpop.f32.mrb[47].mxu0 }
 0x803   : > { %vm2345_vm8 = vcmp.gt.f32.partialorder %v2344_v62, 0.0  ;;  %v2346_v1 = vmul.f32 0.2, %v2344_v62 }
 0x805   : > { %v2347_v2 = vsel %vm2345_vm8, %v2344_v62, %v2346_v1 }
 0x806   : > { %v2348_v3 = vpack.c.bf16 %v2347_v2, %v2347_v2 }
 0x808   : > { %v4804_v4 = vsel %vm1733_vm6, %v2348_v3, 0 }
 0x809   : > { %3898 = vmatpush3.bf16.msra.mxu1 %v4804_v4 }
 0x80a   : > { %3903 = vmatprep.subr.bf16.mxu1 %v4157_v0 }
 0x80c   : > { %3900 = vmatmul.mubr.msk.bf16.vlgmr.msra.gmra.mrb[48].mxu1 %vm1729_vm7, %v2349_v5 }
 0x80d   : > { %3904 = vmatpush3.bf16.msra.mxu1 %v4804_v4  ;;  %3905 = vmatprep.mubr.msk.bf16.mxu1 %vm4158_vm0, %v4157_v0 }
 0x80e   : > { %3929 = vmatprep.subr.bf16.mxu1 %v4157_v0 }
 0x814   : > { %3906 = vmatmul.mubr.msk.bf16.vlgmr.msra.gmra.mrb[52].mxu1 %vm1729_vm7, %v3306_v6  ;;  %v3392_v6 = vld [vmem:[%s4966_s12] ss:$0 sm:$0xff] }
 0x815   : > { %3930 = vmatpush3.bf16.msra.mxu1 %v4113_v7  ;;  %3945 = vmatprep.mubr.msk.bf16.mxu1 %vm4158_vm0, %v4157_v0 }
 0x816   : > { %3931 = vmatprep.subr.bf16.mxu1 %v4157_v0 }
 0x819   : > { %3932 = vmatpush3.bf16.msra.mxu1 %v4114_v8 }
 0x81a   : > { %3933 = vmatprep.subr.bf16.mxu1 %v4157_v0 }
 0x81d   : > { %3934 = vmatpush3.bf16.msra.mxu1 %v4116_v9 }
 0x81e   : > { %3935 = vmatprep.subr.bf16.mxu1 %v4157_v0 }
 0x821   : > { %3936 = vmatpush3.bf16.msra.mxu1 %v4118_v10 }
 0x822   : > { %3937 = vmatprep.subr.bf16.mxu1 %v4157_v0 }
 0x825   : > { %3938 = vmatpush3.bf16.msra.mxu1 %v4120_v11 }
 0x826   : > { %3939 = vmatprep.subr.bf16.mxu1 %v4157_v0 }
 0x829   : > { %3940 = vmatpush3.bf16.msra.mxu1 %v4122_v12 }
 0x82a   : > { %3941 = vmatprep.subr.bf16.mxu1 %v4157_v0 }
 0x82d   : > { %3942 = vmatpush3.bf16.msra.mxu1 %v4124_v13 }
 0x82e   : > { %3943 = vmatprep.subr.bf16.mxu1 %v4157_v0 }
 0x831   : > { %3944 = vmatpush3.bf16.msra.mxu1 %v4126_v14 }
 0x832   : > { %3955 = vmatprep.subr.bf16.mxu1 %v4157_v0 }
 0x8df   : > { %v2390_v17 = vpop.f32.mrb[48].mxu1 }
 0x8e0   : > { %v2396_v19 = vpack.c.bf16 %v2390_v17, %v2390_v17  ;;  %v3901_v20 = vpop.f32.mrb[49].mxu1 }
 0x8e1   : > { %v2393_v21 = vpop.f32.mrb[50].mxu1 }
 0x8e2   : > { %v3902_v22 = vpop.f32.mrb[51].mxu1  ;;  %3946 = vmatmul.mubr.bf16.vlgmr.msra.gmra.mrb[56].mxu1 %v2396_v19 }
 0x8e3   : > { %3956 = vmatpush3.bf16.msra.mxu1 %v4129_v18  ;;  %3971 = vmatprep.mubr.msk.bf16.mxu1 %vm4158_vm0, %v4157_v0 }
 0x8e4   : > { %3957 = vmatprep.subr.bf16.mxu1 %v4157_v0 }
 0x8e7   : > { %v2452_v24 = vpop.f32.mrb[52].mxu1  ;;  %3958 = vmatpush3.bf16.msra.mxu1 %v4130_v23 }
 0x8e8   : > { %v2458_v25 = vpack.c.bf16 %v2452_v24, %v2452_v24  ;;  %v3907_v26 = vpop.f32.mrb[53].mxu1  ;;  %3959 = vmatprep.subr.bf16.mxu1 %v4157_v0 }
 0x8e9   : > { %v2455_v28 = vpop.f32.mrb[54].mxu1 }
 0x8ea   : > { %3926 = vmatmul.mubr.bf16.vlgmr.msra.gmra.mrb[48].mxu0 %v2458_v25  ;;  %v3908_v29 = vpop.f32.mrb[55].mxu1 }
 0x8eb   : > { %3950 = vmatpush3.bf16.msra.mxu0 %v4804_v4  ;;  %3951 = vmatprep.mubr.msk.bf16.mxu0 %vm4158_vm0, %v4157_v0 }
 0x8ec   : > { %3975 = vmatprep.subr.bf16.mxu0 %v4157_v0  ;;  %3960 = vmatpush3.bf16.msra.mxu1 %v4131_v27 }
 0x8ed   : > { %3961 = vmatprep.subr.bf16.mxu1 %v4157_v0 }
 0x8f0   : > { %3962 = vmatpush3.bf16.msra.mxu1 %v4133_v30 }
 0x8f1   : > { %3963 = vmatprep.subr.bf16.mxu1 %v4157_v0 }
 0x8f2   : > { %3952 = vmatmul.mubr.msk.bf16.vlgmr.msra.gmra.mrb[52].mxu0 %vm1729_vm7, %v3340_v31 }
 0x8f3   : > { %3976 = vmatpush3.bf16.msra.mxu0 %v4804_v4  ;;  %3977 = vmatprep.mubr.msk.bf16.mxu0 %vm4158_vm0, %v4157_v0 }
 0x8f4   : > { %3981 = vmatprep.subr.bf16.mxu0 %v4157_v0  ;;  %3964 = vmatpush3.bf16.msra.mxu1 %v4135_v35 }
 0x8f5   : > { %3965 = vmatprep.subr.bf16.mxu1 %v4157_v0 }
 0x8f8   : > { %3966 = vmatpush3.bf16.msra.mxu1 %v4137_v37 }
 0x8f9   : > { %3967 = vmatprep.subr.bf16.mxu1 %v4157_v0 }
 0x8fa   : > { %3978 = vmatmul.mubr.msk.bf16.vlgmr.msra.gmra.mrb[56].mxu0 %vm1729_vm7, %v3366_v32 }
 0x8fb   : > { %3982 = vmatpush3.bf16.msra.mxu0 %v4132_v33  ;;  %3997 = vmatprep.mubr.msk.bf16.mxu0 %vm4158_vm0, %v4157_v0 }
 0x8fc   : > { %3983 = vmatprep.subr.bf16.mxu0 %v4157_v0  ;;  %3968 = vmatpush3.bf16.msra.mxu1 %v4139_v39 }
 0x8fd   : > { %3969 = vmatprep.subr.bf16.mxu1 %v4157_v0 }
 0x8ff   : > { %3984 = vmatpush3.bf16.msra.mxu0 %v4134_v34 }
 0x900   : > { %3985 = vmatprep.subr.bf16.mxu0 %v4157_v0  ;;  %3970 = vmatpush3.bf16.msra.mxu1 %v4141_v41 }
 0x903   : > { %3986 = vmatpush3.bf16.msra.mxu0 %v4136_v36 }
 0x904   : > { %3987 = vmatprep.subr.bf16.mxu0 %v4157_v0 }
 0x907   : > { %3988 = vmatpush3.bf16.msra.mxu0 %v4138_v38 }
 0x908   : > { %3989 = vmatprep.subr.bf16.mxu0 %v4157_v0 }
 0x90b   : > { %3990 = vmatpush3.bf16.msra.mxu0 %v4140_v40 }
 0x90c   : > { %3991 = vmatprep.subr.bf16.mxu0 %v4157_v0 }
 0x90f   : > { %3992 = vmatpush3.bf16.msra.mxu0 %v4142_v42 }
 0x910   : > { %3993 = vmatprep.subr.bf16.mxu0 %v4157_v0 }
 0x913   : > { %3994 = vmatpush3.bf16.msra.mxu0 %v4143_v43 }
 0x914   : > { %3995 = vmatprep.subr.bf16.mxu0 %v4157_v0 }
 0x917   : > { %3996 = vmatpush3.bf16.msra.mxu0 %v4144_v44 }
 0x9b5   : > { %v2646_v45 = vpop.f32.mrb[56].mxu1 }
 0x9b6   : > { %v3947_v46 = vpop.f32.mrb[57].mxu1 }
 0x9b7   : > { %v2649_v47 = vpop.f32.mrb[58].mxu1 }
 0x9b8   : > { %v3948_v48 = vpop.f32.mrb[59].mxu1 }
 0x9bd   : > { %v2558_v49 = vpop.f32.mrb[48].mxu0 }
 0x9be   : > { %v2647_v50 = vadd.f32 %v2646_v45, %v2558_v49  ;;  %v3927_v51 = vpop.f32.mrb[49].mxu0 }
 0x9bf   : > { %v2561_v52 = vpop.f32.mrb[50].mxu0 }
 0x9c0   : > { %v3928_v53 = vpop.f32.mrb[51].mxu0 }
 0x9c5   : > { %v2691_v54 = vpop.f32.mrb[52].mxu0 }
 0x9c6   : > { %v2697_v55 = vpack.c.bf16 %v2691_v54, %v2691_v54  ;;  %v3953_v56 = vpop.f32.mrb[53].mxu0 }
 0x9c7   : > { %v2694_v57 = vpop.f32.mrb[54].mxu0 }
 0x9c8   : > { %3972 = vmatmul.mubr.bf16.vlgmr.msra.gmra.mrb[60].mxu1 %v2697_v55  ;;  %v3954_v0 = vpop.f32.mrb[55].mxu0 }
 0x9cd   : > { %v2843_v58 = vpop.f32.mrb[56].mxu0 }
 0x9ce   : > { %v2849_v59 = vpack.c.bf16 %v2843_v58, %v2843_v58  ;;  %v3979_v60 = vpop.f32.mrb[57].mxu0 }
 0x9cf   : > { %v2846_v61 = vpop.f32.mrb[58].mxu0 }
 0x9d0   : > { %3998 = vmatmul.mubr.bf16.vlgmr.msra.gmra.mrb[60].mxu0 %v2849_v59  ;;  %v3980_v62 = vpop.f32.mrb[59].mxu0 }
 0xa9b   : > { %v2797_v63 = vpop.f32.mrb[60].mxu1 }
 0xa9c   : > { %v2803_v1 = vadd.f32 %v2797_v63, %v2647_v50  ;;  %v3973_v2 = vpop.f32.mrb[61].mxu1 }
 0xa9d   : > { %v2800_v3 = vpop.f32.mrb[62].mxu1 }
 0xa9e   : > { %v3974_v4 = vpop.f32.mrb[63].mxu1 }
 0xaa3   : > { %v2949_v5 = vpop.f32.mrb[60].mxu0 }
 0xaa4   : > { %v2955_v7 = vadd.f32 %v2949_v5, %v2803_v1  ;;  %v3999_v8 = vpop.f32.mrb[61].mxu0 }
 0xaa5   : > { %v2952_v9 = vpop.f32.mrb[62].mxu0 }
 0xaa6   : > { %v2963_v10 = vadd.f32 %v3392_v6, %v2955_v7  ;;  %v4000_v11 = vpop.f32.mrb[63].mxu0 }
 0xaa8   : > { %v3393_v12 = vmul.f32 -1.442695, %v2963_v10 }
 0xaaa   : > { %4145 = vpow2.f32 %v3393_v12 }
 0xab4   : > { %v4146_v13 = vpop.eup %4145 }
 0xab5   : > { %v2967_v14 = vadd.f32 1.0, %v4146_v13 }
 0xab7   : > { %4147 = vrcp.f32 %v2967_v14 }
 0xac1   : > { %v4148_v15 = vpop.eup %4147 }
 0xac2   : > { %2970 = vst [vmem:[%s438_s30] sm:$0xff] %v4148_v15 }
 0xac3 PF: > { %s23_s25 = sadd.s32 1, %s4155_s25  }
 0xac4   : > { %p20_p4 = scmp.ge.s32.totalorder %s23_s25, 4  }
 0xac6   :  { %22 = sbr.rel (!%p20_p4) target bundleno = 1 (0x1), region = 126 }

</bundles_post_ra>
